<compile_context>
chip_gen: v7x
topology: tpu7x:2x2x1
jax: 0.10.0
libtpu: 0.0.40
codegen_flags: <defaults>
</compile_context>

<pallas_src>
import functools

import jax
import jax.numpy as jnp
from jax.experimental import pallas as pl
from jax.experimental.pallas import tpu as pltpu


def _round_up(v, m):
    return (v + m - 1) // m * m


# ----------------------------------------------------------------------------
# Pallas kernel: fused  o = relu(x @ w + b)  over one M tile (full K, full N).
# ----------------------------------------------------------------------------
def _linear_kernel(x_ref, w_ref, b_ref, o_ref, *, relu):
    acc = jnp.dot(x_ref[...], w_ref[...], preferred_element_type=jnp.float32)
    acc = acc + b_ref[...]
    if relu:
        acc = jnp.maximum(acc, 0.0)
    o_ref[...] = acc.astype(o_ref.dtype)


def linear_pallas(x, w_pad, b_pad, *, n_out, relu=False, tile_m=256):
    """y = x @ w + b (optionally ReLU).

    x:     (M, K) float32/bfloat16 activations (unpadded).
    w_pad: (Kp, Np) bfloat16, pre-padded weight (Kp = round_up(K,16), Np = round_up(N,128)).
    b_pad: (1, Np) float32, pre-padded bias.
    Returns (M, n_out) float32.
    """
    M, K = x.shape
    Kp, Np = w_pad.shape
    assert K <= Kp and n_out <= Np

    tile_m = min(tile_m, _round_up(M, 8))
    Mp = _round_up(M, tile_m)

    xp = jnp.pad(x.astype(jnp.bfloat16), ((0, Mp - M), (0, Kp - K)))

    out = pl.pallas_call(
        functools.partial(_linear_kernel, relu=relu),
        out_shape=jax.ShapeDtypeStruct((Mp, Np), jnp.float32),
        grid_spec=pltpu.PrefetchScalarGridSpec(
            num_scalar_prefetch=0,
            grid=(Mp // tile_m,),
            in_specs=[
                pl.BlockSpec((tile_m, Kp), lambda i: (i, 0)),
                pl.BlockSpec((Kp, Np), lambda i: (0, 0)),
                pl.BlockSpec((1, Np), lambda i: (0, 0)),
            ],
            out_specs=pl.BlockSpec((tile_m, Np), lambda i: (i, 0)),
        ),
        compiler_params=pltpu.CompilerParams(
            dimension_semantics=("parallel",)
        ),
    )(xp, w_pad, b_pad)
    return out[:M, :n_out]


# ----------------------------------------------------------------------------
# im2col glue (plain JAX) for stride-2, pad-1, 3x3 convolutions, NHWC layout.
# ----------------------------------------------------------------------------
def im2col_nhwc(x, ksize=3, stride=2, pad=1):
    N, H, W, C = x.shape
    xp = jnp.pad(x, ((0, 0), (pad, pad), (pad, pad), (0, 0)))
    Ho = (H + 2 * pad - ksize) // stride + 1
    Wo = (W + 2 * pad - ksize) // stride + 1
    patches = []
    for i in range(ksize):
        for j in range(ksize):
            patches.append(
                xp[:, i : i + stride * Ho : stride, j : j + stride * Wo : stride, :]
            )
    # (N, Ho, Wo, kh*kw, C) with K ordered (kh, kw, c)
    col = jnp.stack(patches, axis=3).reshape(N, Ho, Wo, ksize * ksize * C)
    return col.reshape(N * Ho * Wo, ksize * ksize * C), Ho, Wo


# ----------------------------------------------------------------------------
# Parameters: raw torch-shaped params -> padded bf16 im2col / folded matrices.
# ----------------------------------------------------------------------------
def init_params(key, latent_dim=32):
    ks = jax.random.split(key, 8)
    scale = lambda fan_in: 1.0 / jnp.sqrt(fan_in)
    return {
        "conv1_w": jax.random.normal(ks[0], (32, 1, 3, 3), jnp.float32) * scale(1 * 9),
        "conv1_b": jax.random.normal(ks[1], (32,), jnp.float32) * 0.01,
        "conv2_w": jax.random.normal(ks[2], (64, 32, 3, 3), jnp.float32) * scale(32 * 9),
        "conv2_b": jax.random.normal(ks[3], (64,), jnp.float32) * 0.01,
        "enc_fc_w": jax.random.normal(ks[4], (latent_dim, 64 * 7 * 7), jnp.float32)
        * scale(64 * 7 * 7),
        "enc_fc_b": jax.random.normal(ks[5], (latent_dim,), jnp.float32) * 0.01,
        "cls_w": jax.random.normal(ks[6], (10, latent_dim), jnp.float32) * scale(latent_dim),
        "cls_b": jax.random.normal(ks[7], (10,), jnp.float32) * 0.01,
    }


def _pad_weight_bf16(w):
    """(K, N) -> (round_up(K,16), round_up(N,128)) bf16."""
    K, N = w.shape
    return jnp.pad(w, ((0, _round_up(K, 16) - K), (0, _round_up(N, 128) - N))).astype(
        jnp.bfloat16
    )


def _pad_bias_f32(b):
    N = b.shape[0]
    Np = _round_up(N, 128)
    return jnp.pad(b, (0, Np - N)).astype(jnp.float32).reshape(1, Np)


def prepare_params(raw, latent_dim=32):
    """One-time reshape / permutation / padding / bf16 cast of the weights."""
    # conv weights: torch (Cout, Cin, kh, kw) -> im2col (kh*kw*Cin, Cout) for NHWC cols
    w1 = jnp.transpose(raw["conv1_w"], (2, 3, 1, 0)).reshape(9 * 1, 32)
    w2 = jnp.transpose(raw["conv2_w"], (2, 3, 1, 0)).reshape(9 * 32, 64)

    # encoder FC: torch columns are (c, h, w) flatten order; activations here are
    # (h, w, c) order, so permute the columns once.
    enc_w = raw["enc_fc_w"].reshape(latent_dim, 64, 7, 7)
    enc_w = jnp.transpose(enc_w, (0, 2, 3, 1)).reshape(latent_dim, 64 * 7 * 7)

    # fold encoder FC + classifier (no activation between them in this module)
    head_w = enc_w.T @ raw["cls_w"].T                    # (3136, 10)
    head_b = raw["enc_fc_b"] @ raw["cls_w"].T + raw["cls_b"]  # (10,)

    return {
        "conv1_w": _pad_weight_bf16(w1),
        "conv1_b": _pad_bias_f32(raw["conv1_b"]),
        "conv2_w": _pad_weight_bf16(w2),
        "conv2_b": _pad_bias_f32(raw["conv2_b"]),
        "head_w": _pad_weight_bf16(head_w),
        "head_b": _pad_bias_f32(head_b),
    }


# ----------------------------------------------------------------------------
# Forward pass.
# ----------------------------------------------------------------------------
@jax.jit
def mnist_classifier_forward(params, x):
    """x: (N, 1, 28, 28) float32 NCHW -> logits (N, 10)."""
    N = x.shape[0]
    x = jnp.transpose(x, (0, 2, 3, 1))  # NCHW -> NHWC once, channel-last thereafter

    col, Ho, Wo = im2col_nhwc(x)                                   # (N*14*14, 9)
    h = linear_pallas(col, params["conv1_w"], params["conv1_b"],
                      n_out=32, relu=True)                         # (N*14*14, 32)
    h = h.reshape(N, Ho, Wo, 32)                                   # NHWC

    col, Ho2, Wo2 = im2col_nhwc(h)                                 # (N*7*7, 288)
    h = linear_pallas(col, params["conv2_w"], params["conv2_b"],
                      n_out=64, relu=True)                         # (N*7*7, 64)
    h = h.reshape(N, Ho2 * Wo2 * 64)                               # (h, w, c) flatten

    # fused encoder-FC + classifier (weights folded at prep time)
    logits = linear_pallas(h, params["head_w"], params["head_b"],
                           n_out=10, relu=False)                   # (N, 10)
    return logits


if __name__ == "__main__":
    key = jax.random.PRNGKey(0)
    k_param, k_data = jax.random.split(key)

    latent_dim = 32
    raw_params = init_params(k_param, latent_dim=latent_dim)
    params = prepare_params(raw_params, latent_dim=latent_dim)

    # small deterministic MNIST-shaped input, NCHW
    x = jax.random.normal(k_data, (2, 1, 28, 28), jnp.float32)

    logits = mnist_classifier_forward(params, x)
    logits = jax.block_until_ready(logits)

    assert logits.shape == (2, 10), logits.shape
    assert jnp.all(jnp.isfinite(logits))
    print("KERNEL_OK")
</pallas_src>

<mosaic_0001>
module attributes {stable_mosaic.version = 11 : i64} {
  func.func @_linear_kernel(%arg0: i32, %arg1: memref<256x16xbf16, #tpu.memory_space<vmem>>, %arg2: memref<16x128xbf16, #tpu.memory_space<vmem>>, %arg3: memref<1x128xf32, #tpu.memory_space<vmem>>, %arg4: memref<256x128xf32, #tpu.memory_space<vmem>>) attributes {dimension_semantics = [#tpu.dimension_semantics<parallel>], iteration_bounds = array<i64: 2>, scalar_prefetch = 0 : i64, scratch_operands = 0 : i64, tpu.core_type = #tpu.core_type<tc>, window_params = [{transform_indices = @transform_0, window_bounds = array<i64: 256, 16>}, {pipeline_mode = #tpu.pipeline_mode<synchronous>, transform_indices = @transform_1, window_bounds = array<i64: 16, 128>}, {pipeline_mode = #tpu.pipeline_mode<synchronous>, transform_indices = @transform_2, window_bounds = array<i64: 1, 128>}, {transform_indices = @transform_3, window_bounds = array<i64: 256, 128>}]} {
    %c0 = arith.constant 0 : index
    %c0_0 = arith.constant 0 : index
    %0 = vector.load %arg1[%c0, %c0_0] : memref<256x16xbf16, #tpu.memory_space<vmem>>, vector<256x16xbf16>
    %c0_1 = arith.constant 0 : index
    %c0_2 = arith.constant 0 : index
    %1 = vector.load %arg2[%c0_1, %c0_2] : memref<16x128xbf16, #tpu.memory_space<vmem>>, vector<16x128xbf16>
    %cst = arith.constant dense<0.000000e+00> : vector<256x128xf32>
    %2 = tpu.matmul %0, %1, %cst {dimension_numbers = #tpu.dot_dimension_numbers<[1], [0], [0], [1], [0, 0, 1, 1], [], []>} : vector<256x16xbf16>, vector<16x128xbf16>, vector<256x128xf32> -> vector<256x128xf32>
    %c0_3 = arith.constant 0 : index
    %c0_4 = arith.constant 0 : index
    %3 = vector.load %arg3[%c0_3, %c0_4] : memref<1x128xf32, #tpu.memory_space<vmem>>, vector<1x128xf32>
    %4 = vector.broadcast %3 : vector<1x128xf32> to vector<256x128xf32>
    %5 = arith.addf %2, %4 : vector<256x128xf32>
    %cst_5 = arith.constant 0.000000e+00 : f32
    %6 = vector.broadcast %cst_5 : f32 to vector<256x128xf32>
    %7 = arith.maximumf %5, %6 : vector<256x128xf32>
    %c0_6 = arith.constant 0 : index
    %c0_7 = arith.constant 0 : index
    %8 = vector.load %arg4[%c0_6, %c0_7] : memref<256x128xf32, #tpu.memory_space<vmem>>, vector<256x128xf32>
    tpu.vector_store %arg4[%c0_6, %c0_7], %7 {strides = array<i32>} : memref<256x128xf32, #tpu.memory_space<vmem>>, vector<256x128xf32>,
    return
  }
  func.func @transform_0(%arg0: i32) -> (i32, i32) {
    %c0_i32 = arith.constant 0 : i32
    %c0_i32_0 = arith.constant 0 : i32
    return %arg0, %c0_i32 : i32, i32
  }
  func.func @transform_1(%arg0: i32) -> (i32, i32) {
    %c0_i32 = arith.constant 0 : i32
    %c0_i32_0 = arith.constant 0 : i32
    %c0_i32_1 = arith.constant 0 : i32
    return %c0_i32, %c0_i32_0 : i32, i32
  }
  func.func @transform_2(%arg0: i32) -> (i32, i32) {
    %c0_i32 = arith.constant 0 : i32
    %c0_i32_0 = arith.constant 0 : i32
    %c0_i32_1 = arith.constant 0 : i32
    return %c0_i32, %c0_i32_0 : i32, i32
  }
  func.func @transform_3(%arg0: i32) -> (i32, i32) {
    %c0_i32 = arith.constant 0 : i32
    %c0_i32_0 = arith.constant 0 : i32
    return %arg0, %c0_i32 : i32, i32
  }
}

module attributes {stable_mosaic.version = 11 : i64} {
  func.func @_linear_kernel(%arg0: i32, %arg1: memref<104x288xbf16, #tpu.memory_space<vmem>>, %arg2: memref<288x128xbf16, #tpu.memory_space<vmem>>, %arg3: memref<1x128xf32, #tpu.memory_space<vmem>>, %arg4: memref<104x128xf32, #tpu.memory_space<vmem>>) attributes {dimension_semantics = [#tpu.dimension_semantics<parallel>], iteration_bounds = array<i64: 1>, scalar_prefetch = 0 : i64, scratch_operands = 0 : i64, tpu.core_type = #tpu.core_type<tc>, window_params = [{transform_indices = @transform_0, window_bounds = array<i64: 104, 288>}, {pipeline_mode = #tpu.pipeline_mode<synchronous>, transform_indices = @transform_1, window_bounds = array<i64: 288, 128>}, {pipeline_mode = #tpu.pipeline_mode<synchronous>, transform_indices = @transform_2, window_bounds = array<i64: 1, 128>}, {transform_indices = @transform_3, window_bounds = array<i64: 104, 128>}]} {
    %c0 = arith.constant 0 : index
    %c0_0 = arith.constant 0 : index
    %0 = vector.load %arg1[%c0, %c0_0] : memref<104x288xbf16, #tpu.memory_space<vmem>>, vector<104x288xbf16>
    %c0_1 = arith.constant 0 : index
    %c0_2 = arith.constant 0 : index
    %1 = vector.load %arg2[%c0_1, %c0_2] : memref<288x128xbf16, #tpu.memory_space<vmem>>, vector<288x128xbf16>
    %cst = arith.constant dense<0.000000e+00> : vector<104x128xf32>
    %2 = tpu.matmul %0, %1, %cst {dimension_numbers = #tpu.dot_dimension_numbers<[1], [0], [0], [1], [0, 0, 1, 1], [], []>} : vector<104x288xbf16>, vector<288x128xbf16>, vector<104x128xf32> -> vector<104x128xf32>
    %c0_3 = arith.constant 0 : index
    %c0_4 = arith.constant 0 : index
    %3 = vector.load %arg3[%c0_3, %c0_4] : memref<1x128xf32, #tpu.memory_space<vmem>>, vector<1x128xf32>
    %4 = vector.broadcast %3 : vector<1x128xf32> to vector<104x128xf32>
    %5 = arith.addf %2, %4 : vector<104x128xf32>
    %cst_5 = arith.constant 0.000000e+00 : f32
    %6 = vector.broadcast %cst_5 : f32 to vector<104x128xf32>
    %7 = arith.maximumf %5, %6 : vector<104x128xf32>
    %c0_6 = arith.constant 0 : index
    %c0_7 = arith.constant 0 : index
    %8 = vector.load %arg4[%c0_6, %c0_7] : memref<104x128xf32, #tpu.memory_space<vmem>>, vector<104x128xf32>
    tpu.vector_store %arg4[%c0_6, %c0_7], %7 {strides = array<i32>} : memref<104x128xf32, #tpu.memory_space<vmem>>, vector<104x128xf32>,
    return
  }
  func.func @transform_0(%arg0: i32) -> (i32, i32) {
    %c0_i32 = arith.constant 0 : i32
    %c0_i32_0 = arith.constant 0 : i32
    return %arg0, %c0_i32 : i32, i32
  }
  func.func @transform_1(%arg0: i32) -> (i32, i32) {
    %c0_i32 = arith.constant 0 : i32
    %c0_i32_0 = arith.constant 0 : i32
    %c0_i32_1 = arith.constant 0 : i32
    return %c0_i32, %c0_i32_0 : i32, i32
  }
  func.func @transform_2(%arg0: i32) -> (i32, i32) {
    %c0_i32 = arith.constant 0 : i32
    %c0_i32_0 = arith.constant 0 : i32
    %c0_i32_1 = arith.constant 0 : i32
    return %c0_i32, %c0_i32_0 : i32, i32
  }
  func.func @transform_3(%arg0: i32) -> (i32, i32) {
    %c0_i32 = arith.constant 0 : i32
    %c0_i32_0 = arith.constant 0 : i32
    return %arg0, %c0_i32 : i32, i32
  }
}

module attributes {stable_mosaic.version = 11 : i64} {
  func.func @_linear_kernel(%arg0: i32, %arg1: memref<8x3136xbf16, #tpu.memory_space<vmem>>, %arg2: memref<3136x128xbf16, #tpu.memory_space<vmem>>, %arg3: memref<1x128xf32, #tpu.memory_space<vmem>>, %arg4: memref<8x128xf32, #tpu.memory_space<vmem>>) attributes {dimension_semantics = [#tpu.dimension_semantics<parallel>], iteration_bounds = array<i64: 1>, scalar_prefetch = 0 : i64, scratch_operands = 0 : i64, tpu.core_type = #tpu.core_type<tc>, window_params = [{transform_indices = @transform_0, window_bounds = array<i64: 8, 3136>}, {pipeline_mode = #tpu.pipeline_mode<synchronous>, transform_indices = @transform_1, window_bounds = array<i64: 3136, 128>}, {pipeline_mode = #tpu.pipeline_mode<synchronous>, transform_indices = @transform_2, window_bounds = array<i64: 1, 128>}, {transform_indices = @transform_3, window_bounds = array<i64: 8, 128>}]} {
    %c0 = arith.constant 0 : index
    %c0_0 = arith.constant 0 : index
    %0 = vector.load %arg1[%c0, %c0_0] : memref<8x3136xbf16, #tpu.memory_space<vmem>>, vector<8x3136xbf16>
    %c0_1 = arith.constant 0 : index
    %c0_2 = arith.constant 0 : index
    %1 = vector.load %arg2[%c0_1, %c0_2] : memref<3136x128xbf16, #tpu.memory_space<vmem>>, vector<3136x128xbf16>
    %cst = arith.constant dense<0.000000e+00> : vector<8x128xf32>
    %2 = tpu.matmul %0, %1, %cst {dimension_numbers = #tpu.dot_dimension_numbers<[1], [0], [0], [1], [0, 0, 1, 1], [], []>} : vector<8x3136xbf16>, vector<3136x128xbf16>, vector<8x128xf32> -> vector<8x128xf32>
    %c0_3 = arith.constant 0 : index
    %c0_4 = arith.constant 0 : index
    %3 = vector.load %arg3[%c0_3, %c0_4] : memref<1x128xf32, #tpu.memory_space<vmem>>, vector<1x128xf32>
    %4 = vector.broadcast %3 : vector<1x128xf32> to vector<8x128xf32>
    %5 = arith.addf %2, %4 : vector<8x128xf32>
    %c0_5 = arith.constant 0 : index
    %c0_6 = arith.constant 0 : index
    %6 = vector.load %arg4[%c0_5, %c0_6] : memref<8x128xf32, #tpu.memory_space<vmem>>, vector<8x128xf32>
    tpu.vector_store %arg4[%c0_5, %c0_6], %5 {strides = array<i32>} : memref<8x128xf32, #tpu.memory_space<vmem>>, vector<8x128xf32>,
    return
  }
  func.func @transform_0(%arg0: i32) -> (i32, i32) {
    %c0_i32 = arith.constant 0 : i32
    %c0_i32_0 = arith.constant 0 : i32
    return %arg0, %c0_i32 : i32, i32
  }
  func.func @transform_1(%arg0: i32) -> (i32, i32) {
    %c0_i32 = arith.constant 0 : i32
    %c0_i32_0 = arith.constant 0 : i32
    %c0_i32_1 = arith.constant 0 : i32
    return %c0_i32, %c0_i32_0 : i32, i32
  }
  func.func @transform_2(%arg0: i32) -> (i32, i32) {
    %c0_i32 = arith.constant 0 : i32
    %c0_i32_0 = arith.constant 0 : i32
    %c0_i32_1 = arith.constant 0 : i32
    return %c0_i32, %c0_i32_0 : i32, i32
  }
  func.func @transform_3(%arg0: i32) -> (i32, i32) {
    %c0_i32 = arith.constant 0 : i32
    %c0_i32_0 = arith.constant 0 : i32
    return %arg0, %c0_i32 : i32, i32
  }
}

</mosaic_0001>

<bundles_post_ra>
// kernel: mnist_classifier_forward.3
= control target key start
LH: loop header
LB: loop body
LE: loop exit
PB: predicated region body
PF: predicated region fallthrough
CT: control target
= control target key end

     0   :  { %s783_s12 = smov 0   ;;  %s912_s0 = inlined_call_operand.vmem [shape: bf16[512,16], index: 0, kind: input, shape index: {}]   ;;  %s913_s1 = inlined_call_operand.vmem [shape: bf16[16,128], index: 1, kind: input, shape index: {}]   ;;  %s914_s2 = inlined_call_operand.vmem [shape: f32[1,128], index: 2, kind: input, shape index: {}]   ;;  %s915_s3 = inlined_call_operand.vmem [shape: f32[512,128], index: 3, kind: output, shape index: {}]  }
   0x1 LB: > { %s632_s13 = sadd.s32 4294967295, %s761_s12   ;;  %p636_p0 = scmp.ge.s32.totalorder %s761_s12, 1  ;;  %s761_s12 = sphi %s783_s12, %s13_s12  }
   0x2   : > { %p138_p1 = scmp.lt.s32.totalorder %s761_s12, 3 }
   0x4   : > { %p139_p2 = pnand %p636_p0, %p138_p1 }
   0x5   : > { %v738_v0 = vld [vmem:[%s913_s1] sm:$0xff] (!%p139_p2)   ;;  %s637_s16 = sshll.u32 (!%p139_p2), %s632_s13, 5  ;;  %vm302_vm0 = vcmask (!%p139_p2), 130048  }
   0x6   : > { %142 = sbr.rel (%p139_p2) target bundleno = 263 (0x107), region = 32  ;;  %p163_p3 = scmp.lt.s32.totalorder (!%p139_p2), %s637_s16, 63  ;;  %694 = vmatprep.subr.bf16.mxu0 (!%p139_p2), %v738_v0  ;;  %728 = vmatprep.subr.bf16.mxu1 (!%p139_p2), %v738_v0  ;;  %v837_v17 = vld [vmem:[%s914_s2] ss:$0 sm:$0xff] (!%p139_p2) }
   0x7   : > { %695 = vmatpush3.bf16.msra.mxu0 (!%p139_p2), %v738_v0  ;;  %729 = vmatpush3.bf16.msra.mxu1 (!%p139_p2), %v738_v0 }
   0xd   : > { %s917_s16 = smov (!%p163_p3, %s637_s16), 63 }
   0xe   : > { %s638_s17 = sshll.u32 %s917_s16, 2  ;;  %s640_s23 = sshll.u32 %s917_s16, 3 }
   0xf   : > { %s800_s20 = scalar_lea.vmem %s912_s0, %s638_s17  ;;  %s844_s26 = scalar_lea.vmem %s915_s3, %s640_s23 }
  0x10   : > { %v739_v1 = vld [vmem:[%s800_s20] sm:$0xff]   ;;  %v741_v3 = vld [vmem:[%s800_s20 + $0x8] sm:$0xff]   ;;  %v743_v5 = vld [vmem:[%s800_s20 + $0x10] sm:$0xff]  }
  0x11   : > { %v740_v2 = vld [vmem:[%s800_s20 + $0x40] sm:$0xff]   ;;  %696 = vmatprep.mubr.msk.bf16.mxu0 %vm302_vm0, %v739_v1  ;;  %v742_v4 = vld [vmem:[%s800_s20 + $0x48] sm:$0xff]   ;;  %v744_v6 = vld [vmem:[%s800_s20 + $0x50] sm:$0xff]  }
  0x12   : > { %712 = vmatprep.mubr.msk.bf16.mxu1 %vm302_vm0, %v740_v2  ;;  %697 = vmatmul.mubr.msk.bf16.vlgmr.msra.gmra.mrb[0].mxu0 %vm302_vm0, %v741_v3  ;;  %v745_v7 = vld [vmem:[%s800_s20 + $0x18] sm:$0xff]   ;;  %v747_v9 = vld [vmem:[%s800_s20 + $0x20] sm:$0xff]   ;;  %v749_v11 = vld [vmem:[%s800_s20 + $0x28] sm:$0xff]  }
  0x13   : > { %713 = vmatmul.mubr.msk.bf16.vlgmr.msra.gmra.mrb[0].mxu1 %vm302_vm0, %v742_v4  ;;  %700 = vmatprep.mubr.msk.bf16.mxu0 %vm302_vm0, %v743_v5  ;;  %v746_v8 = vld [vmem:[%s800_s20 + $0x58] sm:$0xff]   ;;  %v748_v10 = vld [vmem:[%s800_s20 + $0x60] sm:$0xff]   ;;  %v750_v12 = vld [vmem:[%s800_s20 + $0x68] sm:$0xff]  }
  0x14   : > { %716 = vmatprep.mubr.msk.bf16.mxu1 %vm302_vm0, %v744_v6  ;;  %v751_v13 = vld [vmem:[%s800_s20 + $0x30] sm:$0xff]   ;;  %v753_v15 = vld [vmem:[%s800_s20 + $0x38] sm:$0xff]  }
  0x15   : > { %v752_v14 = vld [vmem:[%s800_s20 + $0x70] sm:$0xff]   ;;  %v754_v16 = vld [vmem:[%s800_s20 + $0x78] sm:$0xff]  }
  0x1a   : > { %701 = vmatmul.mubr.msk.bf16.gmra.mrb[4].mxu0 %vm302_vm0, %v745_v7 }
  0x1b   : > { %717 = vmatmul.mubr.msk.bf16.gmra.mrb[4].mxu1 %vm302_vm0, %v746_v8  ;;  %704 = vmatprep.mubr.msk.bf16.mxu0 %vm302_vm0, %v747_v9 }
  0x1c   : > { %720 = vmatprep.mubr.msk.bf16.mxu1 %vm302_vm0, %v748_v10 }
  0x22   : > { %705 = vmatmul.mubr.msk.bf16.gmra.mrb[8].mxu0 %vm302_vm0, %v749_v11 }
  0x23   : > { %721 = vmatmul.mubr.msk.bf16.gmra.mrb[8].mxu1 %vm302_vm0, %v750_v12  ;;  %708 = vmatprep.mubr.msk.bf16.mxu0 %vm302_vm0, %v751_v13 }
  0x24   : > { %724 = vmatprep.mubr.msk.bf16.mxu1 %vm302_vm0, %v752_v14 }
  0x2a   : > { %709 = vmatmul.mubr.msk.bf16.gmra.mrb[12].mxu0 %vm302_vm0, %v753_v15 }
  0x2b   : > { %725 = vmatmul.mubr.msk.bf16.gmra.mrb[12].mxu1 %vm302_vm0, %v754_v16 }
  0xe5   : > { %v698_v18 = vpop.f32.mrb[0].mxu0 }
  0xe6   : > { %v394_v19 = vadd.f32 %v698_v18, %v837_v17  ;;  %v714_v20 = vpop.f32.mrb[0].mxu1  ;;  %v385_v21 = vpop.f32.mrb[1].mxu0 }
  0xe7   : > { %v458_v22 = vadd.f32 %v714_v20, %v837_v17  ;;  %v386_v23 = vadd.f32 %v837_v17, %v385_v21  ;;  %v449_v24 = vpop.f32.mrb[1].mxu1  ;;  %v699_v25 = vpop.f32.mrb[2].mxu0 }
  0xe8   : > { %v514_v26 = vmax.f32 %v394_v19, 0.0  ;;  %v450_v27 = vadd.f32 %v837_v17, %v449_v24  ;;  %v397_v28 = vadd.f32 %v699_v25, %v837_v17  ;;  %v715_v29 = vpop.f32.mrb[2].mxu1  ;;  %v388_v30 = vpop.f32.mrb[3].mxu0 }
  0xe9   : > { %v530_v31 = vmax.f32 %v458_v22, 0.0  ;;  %v512_v32 = vmax.f32 %v386_v23, 0.0  ;;  %v461_v33 = vadd.f32 %v715_v29, %v837_v17  ;;  %v389_v34 = vadd.f32 %v837_v17, %v388_v30  ;;  %v452_v35 = vpop.f32.mrb[3].mxu1 }
  0xea   : > { %546 = vst [vmem:[%s844_s26 + $0x10] sm:$0xff] %v514_v26  ;;  %v528_v36 = vmax.f32 %v450_v27, 0.0  ;;  %v515_v37 = vmax.f32 %v397_v28, 0.0  ;;  %v453_v38 = vadd.f32 %v837_v17, %v452_v35 }
  0xeb   : > { %562 = vst [vmem:[%s844_s26 + $0x90] sm:$0xff] %v530_v31  ;;  %544 = vst [vmem:[%s844_s26] sm:$0xff] %v512_v32  ;;  %v531_v39 = vmax.f32 %v461_v33, 0.0  ;;  %v513_v40 = vmax.f32 %v389_v34, 0.0 }
  0xec   : > { %560 = vst [vmem:[%s844_s26 + $0x80] sm:$0xff] %v528_v36  ;;  %547 = vst [vmem:[%s844_s26 + $0x18] sm:$0xff] %v515_v37  ;;  %v529_v41 = vmax.f32 %v453_v38, 0.0 }
  0xed   : > { %563 = vst [vmem:[%s844_s26 + $0x98] sm:$0xff] %v531_v39  ;;  %545 = vst [vmem:[%s844_s26 + $0x8] sm:$0xff] %v513_v40  ;;  %v702_v42 = vpop.f32.mrb[4].mxu0 }
  0xee   : > { %561 = vst [vmem:[%s844_s26 + $0x88] sm:$0xff] %v529_v41  ;;  %v410_v43 = vadd.f32 %v702_v42, %v837_v17  ;;  %v718_v44 = vpop.f32.mrb[4].mxu1  ;;  %v401_v45 = vpop.f32.mrb[5].mxu0 }
  0xef   : > { %v474_v46 = vadd.f32 %v718_v44, %v837_v17  ;;  %v402_v47 = vadd.f32 %v837_v17, %v401_v45  ;;  %v465_v48 = vpop.f32.mrb[5].mxu1  ;;  %v703_v49 = vpop.f32.mrb[6].mxu0 }
  0xf0   : > { %v518_v50 = vmax.f32 %v410_v43, 0.0  ;;  %v466_v51 = vadd.f32 %v837_v17, %v465_v48  ;;  %v413_v52 = vadd.f32 %v703_v49, %v837_v17  ;;  %v719_v53 = vpop.f32.mrb[6].mxu1  ;;  %v404_v54 = vpop.f32.mrb[7].mxu0 }
  0xf1   : > { %v534_v55 = vmax.f32 %v474_v46, 0.0  ;;  %v516_v56 = vmax.f32 %v402_v47, 0.0  ;;  %v477_v57 = vadd.f32 %v719_v53, %v837_v17  ;;  %v405_v58 = vadd.f32 %v837_v17, %v404_v54  ;;  %v468_v59 = vpop.f32.mrb[7].mxu1 }
  0xf2   : > { %550 = vst [vmem:[%s844_s26 + $0x30] sm:$0xff] %v518_v50  ;;  %v532_v60 = vmax.f32 %v466_v51, 0.0  ;;  %v519_v61 = vmax.f32 %v413_v52, 0.0  ;;  %v469_v62 = vadd.f32 %v837_v17, %v468_v59 }
  0xf3   : > { %566 = vst [vmem:[%s844_s26 + $0xb0] sm:$0xff] %v534_v55  ;;  %548 = vst [vmem:[%s844_s26 + $0x20] sm:$0xff] %v516_v56  ;;  %v535_v63 = vmax.f32 %v477_v57, 0.0  ;;  %v517_v0 = vmax.f32 %v405_v58, 0.0 }
  0xf4   : > { %564 = vst [vmem:[%s844_s26 + $0xa0] sm:$0xff] %v532_v60  ;;  %551 = vst [vmem:[%s844_s26 + $0x38] sm:$0xff] %v519_v61  ;;  %v533_v1 = vmax.f32 %v469_v62, 0.0 }
  0xf5   : > { %567 = vst [vmem:[%s844_s26 + $0xb8] sm:$0xff] %v535_v63  ;;  %549 = vst [vmem:[%s844_s26 + $0x28] sm:$0xff] %v517_v0  ;;  %v706_v2 = vpop.f32.mrb[8].mxu0 }
  0xf6   : > { %565 = vst [vmem:[%s844_s26 + $0xa8] sm:$0xff] %v533_v1  ;;  %v426_v3 = vadd.f32 %v706_v2, %v837_v17  ;;  %v722_v4 = vpop.f32.mrb[8].mxu1  ;;  %v417_v5 = vpop.f32.mrb[9].mxu0 }
  0xf7   : > { %v490_v6 = vadd.f32 %v722_v4, %v837_v17  ;;  %v418_v7 = vadd.f32 %v837_v17, %v417_v5  ;;  %v481_v8 = vpop.f32.mrb[9].mxu1  ;;  %v707_v9 = vpop.f32.mrb[10].mxu0 }
  0xf8   : > { %v522_v10 = vmax.f32 %v426_v3, 0.0  ;;  %v482_v11 = vadd.f32 %v837_v17, %v481_v8  ;;  %v429_v12 = vadd.f32 %v707_v9, %v837_v17  ;;  %v723_v13 = vpop.f32.mrb[10].mxu1  ;;  %v420_v14 = vpop.f32.mrb[11].mxu0 }
  0xf9   : > { %v538_v15 = vmax.f32 %v490_v6, 0.0  ;;  %v520_v16 = vmax.f32 %v418_v7, 0.0  ;;  %v493_v18 = vadd.f32 %v723_v13, %v837_v17  ;;  %v421_v19 = vadd.f32 %v837_v17, %v420_v14  ;;  %v484_v20 = vpop.f32.mrb[11].mxu1 }
  0xfa   : > { %554 = vst [vmem:[%s844_s26 + $0x50] sm:$0xff] %v522_v10  ;;  %v536_v21 = vmax.f32 %v482_v11, 0.0  ;;  %v523_v22 = vmax.f32 %v429_v12, 0.0  ;;  %v485_v23 = vadd.f32 %v837_v17, %v484_v20 }
  0xfb   : > { %570 = vst [vmem:[%s844_s26 + $0xd0] sm:$0xff] %v538_v15  ;;  %552 = vst [vmem:[%s844_s26 + $0x40] sm:$0xff] %v520_v16  ;;  %v539_v24 = vmax.f32 %v493_v18, 0.0  ;;  %v521_v25 = vmax.f32 %v421_v19, 0.0 }
  0xfc   : > { %568 = vst [vmem:[%s844_s26 + $0xc0] sm:$0xff] %v536_v21  ;;  %555 = vst [vmem:[%s844_s26 + $0x58] sm:$0xff] %v523_v22  ;;  %v537_v26 = vmax.f32 %v485_v23, 0.0 }
  0xfd   : > { %571 = vst [vmem:[%s844_s26 + $0xd8] sm:$0xff] %v539_v24  ;;  %553 = vst [vmem:[%s844_s26 + $0x48] sm:$0xff] %v521_v25  ;;  %v710_v27 = vpop.f32.mrb[12].mxu0 }
  0xfe   : > { %569 = vst [vmem:[%s844_s26 + $0xc8] sm:$0xff] %v537_v26  ;;  %v442_v28 = vadd.f32 %v710_v27, %v837_v17  ;;  %v726_v29 = vpop.f32.mrb[12].mxu1  ;;  %v433_v30 = vpop.f32.mrb[13].mxu0 }
  0xff   : > { %v506_v31 = vadd.f32 %v726_v29, %v837_v17  ;;  %v434_v32 = vadd.f32 %v837_v17, %v433_v30  ;;  %v497_v33 = vpop.f32.mrb[13].mxu1  ;;  %v711_v34 = vpop.f32.mrb[14].mxu0 }
 0x100   : > { %v526_v35 = vmax.f32 %v442_v28, 0.0  ;;  %v498_v36 = vadd.f32 %v837_v17, %v497_v33  ;;  %v445_v37 = vadd.f32 %v711_v34, %v837_v17  ;;  %v727_v38 = vpop.f32.mrb[14].mxu1  ;;  %v436_v39 = vpop.f32.mrb[15].mxu0 }
 0x101   : > { %v542_v40 = vmax.f32 %v506_v31, 0.0  ;;  %v524_v41 = vmax.f32 %v434_v32, 0.0  ;;  %v509_v42 = vadd.f32 %v727_v38, %v837_v17  ;;  %v437_v43 = vadd.f32 %v837_v17, %v436_v39  ;;  %v500_v44 = vpop.f32.mrb[15].mxu1 }
 0x102   : > { %558 = vst [vmem:[%s844_s26 + $0x70] sm:$0xff] %v526_v35  ;;  %v540_v45 = vmax.f32 %v498_v36, 0.0  ;;  %v527_v46 = vmax.f32 %v445_v37, 0.0  ;;  %v501_v47 = vadd.f32 %v837_v17, %v500_v44 }
 0x103   : > { %574 = vst [vmem:[%s844_s26 + $0xf0] sm:$0xff] %v542_v40  ;;  %556 = vst [vmem:[%s844_s26 + $0x60] sm:$0xff] %v524_v41  ;;  %v543_v48 = vmax.f32 %v509_v42, 0.0  ;;  %v525_v49 = vmax.f32 %v437_v43, 0.0 }
 0x104   : > { %572 = vst [vmem:[%s844_s26 + $0xe0] sm:$0xff] %v540_v45  ;;  %559 = vst [vmem:[%s844_s26 + $0x78] sm:$0xff] %v527_v46  ;;  %v541_v50 = vmax.f32 %v501_v47, 0.0 }
 0x105   : > { %575 = vst [vmem:[%s844_s26 + $0xf8] sm:$0xff] %v543_v48  ;;  %557 = vst [vmem:[%s844_s26 + $0x68] sm:$0xff] %v525_v49 }
 0x106   : > { %573 = vst [vmem:[%s844_s26 + $0xe8] sm:$0xff] %v541_v50 }
 0x107 PF: > { %s13_s12 = sadd.s32 1, %s761_s12  }
 0x108   : > { %p10_p4 = scmp.ge.s32.totalorder %s13_s12, 4  }
 0x10a   :  { %12 = sbr.rel (!%p10_p4) target bundleno = 1 (0x1), region = 62 }

// kernel: mnist_classifier_forward.4
= control target key start
LH: loop header
LB: loop body
LE: loop exit
PB: predicated region body
PF: predicated region fallthrough
CT: control target
= control target key end

     0   :  { %v713_v1 = vmov 0.0   ;;  %vm714_vm0 = vmmov 0   ;;  %vm292_vm1 = vcmask 261120   ;;  %s929_s1 = inlined_call_operand.vmem [shape: bf16[288,128], index: 1, kind: input, shape index: {}]   ;;  %s930_s0 = inlined_call_operand.vmem [shape: bf16[104,288], index: 0, kind: input, shape index: {}]   ;;  %s931_s2 = inlined_call_operand.vmem [shape: f32[1,128], index: 2, kind: input, shape index: {}]   ;;  %s932_s3 = inlined_call_operand.vmem [shape: f32[104,128], index: 3, kind: output, shape index: {}]  }
   0x1   :  { %v668_v0 = vld [vmem:[%s929_s1 + $0x40] sm:$0xff]   ;;  %634 = vmatprep.subr.bf16.mxu1 %v713_v1  ;;  %638 = vmatprep.mubr.msk.bf16.mxu1 %vm714_vm0, %v713_v1  ;;  %v670_v3 = vld [vmem:[%s929_s1 + $0x48] sm:$0xff]   ;;  %v672_v5 = vld [vmem:[%s929_s1 + $0x50] sm:$0xff]  }
   0x2   :  { %v669_v2 = vld [vmem:[%s929_s1] sm:$0xff]   ;;  %567 = vmatprep.subr.bf16.mxu0 %v668_v0  ;;  %v671_v4 = vld [vmem:[%s929_s1 + $0x8] sm:$0xff]   ;;  %v673_v6 = vld [vmem:[%s929_s1 + $0x10] sm:$0xff]  }
   0x3   :  { %568 = vmatpush3.bf16.msra.mxu0 %v669_v2  ;;  %v674_v7 = vld [vmem:[%s929_s1 + $0x58] sm:$0xff]   ;;  %v676_v9 = vld [vmem:[%s929_s1 + $0x60] sm:$0xff]   ;;  %v678_v12 = vld [vmem:[%s929_s1 + $0x68] sm:$0xff]  }
   0x4   :  { %569 = vmatprep.subr.bf16.mxu0 %v670_v3  ;;  %v675_v8 = vld [vmem:[%s929_s1 + $0x18] sm:$0xff]   ;;  %v682_v10 = vld [vmem:[%s929_s1 + $0x80] sm:$0xff]   ;;  %v679_v13 = vld [vmem:[%s929_s1 + $0x28] sm:$0xff]  }
   0x5   :  { %v677_v11 = vld [vmem:[%s929_s1 + $0x20] sm:$0xff]   ;;  %635 = vmatpush3.bf16.msra.mxu1 %v682_v10  ;;  %v680_v14 = vld [vmem:[%s929_s1 + $0x70] sm:$0xff]   ;;  %v688_v16 = vld [vmem:[%s929_s1 + $0x88] sm:$0xff]  }
   0x6   :  { %636 = vmatprep.subr.bf16.mxu1 %v713_v1  ;;  %v687_v15 = vld [vmem:[%s930_s0 + $0x4] ss:$12 sps:$4 sm:$0xff]   ;;  %v689_v17 = vld [vmem:[%s930_s0 + $0x8] ss:$12 sps:$4 sm:$0xff]   ;;  %v683_v19 = vld [vmem:[%s929_s1 + $0x78] sm:$0xff]  }
   0x7   :  { %570 = vmatpush3.bf16.msra.mxu0 %v671_v4  ;;  %346 = vmatprep.mubr.bf16.mxu0 %v687_v15  ;;  %v681_v18 = vld [vmem:[%s929_s1 + $0x30] sm:$0xff]   ;;  %v684_v20 = vld [vmem:[%s929_s1 + $0x38] sm:$0xff]   ;;  %v693_v21 = vld [vmem:[%s930_s0 + $0x20] ss:$12 sps:$4 sm:$0xff]  }
   0x8   :  { %571 = vmatprep.subr.bf16.mxu0 %v672_v5  ;;  %v685_v22 = vld [vmem:[%s930_s0] ss:$12 sps:$4 sm:$0xff]   ;;  %v690_v23 = vld [vmem:[%s930_s0 + $0x1c] ss:$12 sps:$4 sm:$0xff]   ;;  %v697_v24 = vld [vmem:[%s930_s0 + $0x38] ss:$12 sps:$4 sm:$0xff]  }
   0x9   :  { %637 = vmatpush3.bf16.msra.mxu1 %v688_v16  ;;  %v692_v25 = vld [vmem:[%s930_s0 + $0x18] ss:$12 sps:$4 sm:$0xff]   ;;  %v694_v26 = vld [vmem:[%s930_s0 + $0x34] ss:$12 sps:$4 sm:$0xff]   ;;  %v701_v27 = vld [vmem:[%s930_s0 + $0x50] ss:$12 sps:$4 sm:$0xff]  }
   0xa   :  { %v696_v28 = vld [vmem:[%s930_s0 + $0x30] ss:$12 sps:$4 sm:$0xff]   ;;  %v698_v29 = vld [vmem:[%s930_s0 + $0x4c] ss:$12 sps:$4 sm:$0xff]   ;;  %v705_v30 = vld [vmem:[%s930_s0 + $0x68] ss:$12 sps:$4 sm:$0xff]  }
   0xb   :  { %572 = vmatpush3.bf16.msra.mxu0 %v673_v6  ;;  %v700_v31 = vld [vmem:[%s930_s0 + $0x48] ss:$12 sps:$4 sm:$0xff]   ;;  %v702_v32 = vld [vmem:[%s930_s0 + $0x64] ss:$12 sps:$4 sm:$0xff]   ;;  %v709_v33 = vld [vmem:[%s930_s0 + $0x80] ss:$12 sps:$4 sm:$0xff]  }
   0xc   :  { %573 = vmatprep.subr.bf16.mxu0 %v674_v7  ;;  %639 = vmatmul.mubr.msk.bf16.vlgmr.msra.gmra.mrb[0].mxu1 %vm292_vm1, %v689_v17  ;;  %v704_v34 = vld [vmem:[%s930_s0 + $0x60] ss:$12 sps:$4 sm:$0xff]   ;;  %v706_v35 = vld [vmem:[%s930_s0 + $0x7c] ss:$12 sps:$4 sm:$0xff]   ;;  %v39_v36 = vld [vmem:[%s930_s0 + $0x90] sm:$0xff] }
   0xd   :  { %642 = vmatprep.mubr.msk.bf16.mxu1 %vm714_vm0, %v713_v1  ;;  %v712_v37 = vld [vmem:[%s930_s0 + $0x98] ss:$0 sps:$4 sm:$0xff]   ;;  %v540_v39 = vcombine.high %v39_v36, %v39_v36  ;;  %v539_v40 = vcombine.low %v39_v36, %v39_v36  ;;  %v875_v50 = vld [vmem:[%s931_s2] ss:$0 sm:$0xff] }
   0xe   :  { %v708_v38 = vld [vmem:[%s930_s0 + $0x78] ss:$12 sps:$4 sm:$0xff]  }
   0xf   :  { %574 = vmatpush3.bf16.msra.mxu0 %v675_v8 }
  0x10   :  { %575 = vmatprep.subr.bf16.mxu0 %v676_v9 }
  0x13   :  { %576 = vmatpush3.bf16.msra.mxu0 %v677_v11 }
  0x14   :  { %577 = vmatprep.subr.bf16.mxu0 %v678_v12  ;;  %643 = vmatmul.mubr.msk.bf16.gmra.mrb[4].mxu1 %vm292_vm1, %v693_v21 }
  0x15   :  { %646 = vmatprep.mubr.msk.bf16.mxu1 %vm714_vm0, %v713_v1 }
  0x17   :  { %578 = vmatpush3.bf16.msra.mxu0 %v679_v13 }
  0x18   :  { %579 = vmatprep.subr.bf16.mxu0 %v680_v14 }
  0x1b   :  { %580 = vmatpush3.bf16.msra.mxu0 %v681_v18 }
  0x1c   :  { %581 = vmatprep.subr.bf16.mxu0 %v683_v19  ;;  %647 = vmatmul.mubr.msk.bf16.gmra.mrb[8].mxu1 %vm292_vm1, %v697_v24 }
  0x1d   :  { %650 = vmatprep.mubr.msk.bf16.mxu1 %vm714_vm0, %v713_v1 }
  0x1f   :  { %582 = vmatpush3.bf16.msra.mxu0 %v684_v20 }
  0x22   :  { %347 = vmatmul.mubr.bf16.vlgmr.msra.gmra.mrb[0].mxu0 %v685_v22 }
  0x23   :  { %354 = vmatprep.mubr.bf16.mxu0 %v690_v23 }
  0x24   :  { %651 = vmatmul.mubr.msk.bf16.gmra.mrb[12].mxu1 %vm292_vm1, %v701_v27 }
  0x25   :  { %654 = vmatprep.mubr.msk.bf16.mxu1 %vm714_vm0, %v713_v1 }
  0x2a   :  { %355 = vmatmul.mubr.bf16.gmra.mrb[4].mxu0 %v692_v25 }
  0x2b   :  { %362 = vmatprep.mubr.bf16.mxu0 %v694_v26 }
  0x2c   :  { %655 = vmatmul.mubr.msk.bf16.gmra.mrb[16].mxu1 %vm292_vm1, %v705_v30 }
  0x2d   :  { %658 = vmatprep.mubr.msk.bf16.mxu1 %vm714_vm0, %v713_v1 }
  0x32   :  { %363 = vmatmul.mubr.bf16.gmra.mrb[8].mxu0 %v696_v28 }
  0x33   :  { %370 = vmatprep.mubr.bf16.mxu0 %v698_v29 }
  0x34   :  { %659 = vmatmul.mubr.msk.bf16.gmra.mrb[20].mxu1 %vm292_vm1, %v709_v33 }
  0x35   :  { %662 = vmatprep.mubr.msk.bf16.mxu1 %vm714_vm0, %v713_v1 }
  0x3a   :  { %371 = vmatmul.mubr.bf16.gmra.mrb[12].mxu0 %v700_v31 }
  0x3b   :  { %378 = vmatprep.mubr.bf16.mxu0 %v702_v32 }
  0x3c   :  { %663 = vmatmul.mubr.msk.bf16.gmra.mrb[24].mxu1 %vm292_vm1, %v712_v37 }
  0x42   :  { %379 = vmatmul.mubr.bf16.gmra.mrb[16].mxu0 %v704_v34 }
  0x43   :  { %386 = vmatprep.mubr.bf16.mxu0 %v706_v35 }
  0x4a   :  { %387 = vmatmul.mubr.bf16.gmra.mrb[20].mxu0 %v708_v38 }
  0x4b   :  { %394 = vmatprep.mubr.bf16.mxu0 %v540_v39 }
  0x52   :  { %395 = vmatmul.mubr.bf16.gmra.mrb[24].mxu0 %v539_v40 }
  0xdf   :  { %v436_v41 = vpop.f32.mrb[0].mxu1 }
  0xe0   :  { %v640_v42 = vpop.f32.mrb[1].mxu1 }
  0xe1   :  { %v439_v43 = vpop.f32.mrb[2].mxu1 }
  0xe2   :  { %v641_v44 = vpop.f32.mrb[3].mxu1 }
  0xe7   :  { %v444_v45 = vpop.f32.mrb[4].mxu1 }
  0xe8   :  { %v644_v46 = vpop.f32.mrb[5].mxu1 }
  0xe9   :  { %v447_v48 = vpop.f32.mrb[6].mxu1 }
  0xea   :  { %v645_v51 = vpop.f32.mrb[7].mxu1 }
  0xef   :  { %v452_v59 = vpop.f32.mrb[8].mxu1 }
  0xf0   :  { %v648_v60 = vpop.f32.mrb[9].mxu1 }
  0xf1   :  { %v455_v0 = vpop.f32.mrb[10].mxu1 }
  0xf2   :  { %v649_v2 = vpop.f32.mrb[11].mxu1 }
  0xf5   :  { %v583_v47 = vpop.f32.mrb[0].mxu0 }
  0xf6   :  { %v584_v49 = vpop.f32.mrb[1].mxu0 }
  0xf7   :  { %v585_v52 = vadd.f32 %v584_v49, %v583_v47  ;;  %v586_v53 = vpop.f32.mrb[2].mxu0  ;;  %v460_v11 = vpop.f32.mrb[12].mxu1 }
  0xf8   :  { %v587_v54 = vpop.f32.mrb[3].mxu0  ;;  %v652_v12 = vpop.f32.mrb[13].mxu1 }
  0xf9   :  { %v349_v55 = vadd.f32 %v585_v52, %v875_v50  ;;  %v588_v56 = vadd.f32 %v587_v54, %v586_v53  ;;  %v463_v16 = vpop.f32.mrb[14].mxu1 }
  0xfa   :  { %v653_v18 = vpop.f32.mrb[15].mxu1 }
  0xfb   :  { %v437_v57 = vadd.f32 %v436_v41, %v349_v55  ;;  %v352_v58 = vadd.f32 %v588_v56, %v875_v50 }
  0xfd   :  { %v490_v61 = vmax.f32 %v437_v57, 0.0  ;;  %v440_v62 = vadd.f32 %v439_v43, %v352_v58  ;;  %v589_v63 = vpop.f32.mrb[4].mxu0 }
  0xfe   :  { %v590_v1 = vpop.f32.mrb[5].mxu0 }
  0xff   :  { %503 = vst [vmem:[%s932_s3] sm:$0xff] %v490_v61  ;;  %v491_v3 = vmax.f32 %v440_v62, 0.0  ;;  %v591_v4 = vadd.f32 %v590_v1, %v589_v63  ;;  %v592_v5 = vpop.f32.mrb[6].mxu0  ;;  %v468_v27 = vpop.f32.mrb[16].mxu1 }
 0x100   :  { %v593_v6 = vpop.f32.mrb[7].mxu0  ;;  %v656_v28 = vpop.f32.mrb[17].mxu1 }
 0x101   :  { %504 = vst [vmem:[%s932_s3 + $0x8] sm:$0xff] %v491_v3  ;;  %v357_v7 = vadd.f32 %v591_v4, %v875_v50  ;;  %v594_v8 = vadd.f32 %v593_v6, %v592_v5  ;;  %v471_v32 = vpop.f32.mrb[18].mxu1 }
 0x102   :  { %v657_v34 = vpop.f32.mrb[19].mxu1 }
 0x103   :  { %v445_v9 = vadd.f32 %v444_v45, %v357_v7  ;;  %v360_v10 = vadd.f32 %v594_v8, %v875_v50 }
 0x105   :  { %v492_v13 = vmax.f32 %v445_v9, 0.0  ;;  %v448_v14 = vadd.f32 %v447_v48, %v360_v10  ;;  %v595_v15 = vpop.f32.mrb[8].mxu0 }
 0x106   :  { %v596_v17 = vpop.f32.mrb[9].mxu0 }
 0x107   :  { %505 = vst [vmem:[%s932_s3 + $0x10] sm:$0xff] %v492_v13  ;;  %v493_v19 = vmax.f32 %v448_v14, 0.0  ;;  %v597_v20 = vadd.f32 %v596_v17, %v595_v15  ;;  %v598_v21 = vpop.f32.mrb[10].mxu0  ;;  %v476_v43 = vpop.f32.mrb[20].mxu1 }
 0x108   :  { %v599_v22 = vpop.f32.mrb[11].mxu0  ;;  %v660_v44 = vpop.f32.mrb[21].mxu1 }
 0x109   :  { %506 = vst [vmem:[%s932_s3 + $0x18] sm:$0xff] %v493_v19  ;;  %v365_v23 = vadd.f32 %v597_v20, %v875_v50  ;;  %v600_v24 = vadd.f32 %v599_v22, %v598_v21  ;;  %v479_v48 = vpop.f32.mrb[22].mxu1 }
 0x10a   :  { %v661_v51 = vpop.f32.mrb[23].mxu1 }
 0x10b   :  { %v453_v25 = vadd.f32 %v452_v59, %v365_v23  ;;  %v368_v26 = vadd.f32 %v600_v24, %v875_v50 }
 0x10d   :  { %v494_v29 = vmax.f32 %v453_v25, 0.0  ;;  %v456_v30 = vadd.f32 %v455_v0, %v368_v26  ;;  %v601_v31 = vpop.f32.mrb[12].mxu0 }
 0x10e   :  { %v602_v33 = vpop.f32.mrb[13].mxu0 }
 0x10f   :  { %507 = vst [vmem:[%s932_s3 + $0x20] sm:$0xff] %v494_v29  ;;  %v495_v35 = vmax.f32 %v456_v30, 0.0  ;;  %v603_v36 = vadd.f32 %v602_v33, %v601_v31  ;;  %v604_v37 = vpop.f32.mrb[14].mxu0  ;;  %v484_v60 = vpop.f32.mrb[24].mxu1 }
 0x110   :  { %v605_v38 = vpop.f32.mrb[15].mxu0  ;;  %v664_v61 = vpop.f32.mrb[25].mxu1 }
 0x111   :  { %508 = vst [vmem:[%s932_s3 + $0x28] sm:$0xff] %v495_v35  ;;  %v373_v39 = vadd.f32 %v603_v36, %v875_v50  ;;  %v606_v40 = vadd.f32 %v605_v38, %v604_v37  ;;  %v487_v1 = vpop.f32.mrb[26].mxu1 }
 0x112   :  { %v665_v3 = vpop.f32.mrb[27].mxu1 }
 0x113   :  { %v461_v41 = vadd.f32 %v460_v11, %v373_v39  ;;  %v376_v42 = vadd.f32 %v606_v40, %v875_v50 }
 0x115   :  { %v496_v45 = vmax.f32 %v461_v41, 0.0  ;;  %v464_v46 = vadd.f32 %v463_v16, %v376_v42  ;;  %v607_v47 = vpop.f32.mrb[16].mxu0 }
 0x116   :  { %v608_v49 = vpop.f32.mrb[17].mxu0 }
 0x117   :  { %509 = vst [vmem:[%s932_s3 + $0x30] sm:$0xff] %v496_v45  ;;  %v497_v52 = vmax.f32 %v464_v46, 0.0  ;;  %v609_v53 = vadd.f32 %v608_v49, %v607_v47  ;;  %v610_v54 = vpop.f32.mrb[18].mxu0 }
 0x118   :  { %v611_v55 = vpop.f32.mrb[19].mxu0 }
 0x119   :  { %510 = vst [vmem:[%s932_s3 + $0x38] sm:$0xff] %v497_v52  ;;  %v381_v56 = vadd.f32 %v609_v53, %v875_v50  ;;  %v612_v57 = vadd.f32 %v611_v55, %v610_v54 }
 0x11b   :  { %v469_v58 = vadd.f32 %v468_v27, %v381_v56  ;;  %v384_v59 = vadd.f32 %v612_v57, %v875_v50 }
 0x11d   :  { %v498_v62 = vmax.f32 %v469_v58, 0.0  ;;  %v472_v63 = vadd.f32 %v471_v32, %v384_v59  ;;  %v613_v0 = vpop.f32.mrb[20].mxu0 }
 0x11e   :  { %v614_v2 = vpop.f32.mrb[21].mxu0 }
 0x11f   :  { %511 = vst [vmem:[%s932_s3 + $0x40] sm:$0xff] %v498_v62  ;;  %v499_v4 = vmax.f32 %v472_v63, 0.0  ;;  %v615_v5 = vadd.f32 %v614_v2, %v613_v0  ;;  %v616_v6 = vpop.f32.mrb[22].mxu0 }
 0x120   :  { %v617_v7 = vpop.f32.mrb[23].mxu0 }
 0x121   :  { %512 = vst [vmem:[%s932_s3 + $0x48] sm:$0xff] %v499_v4  ;;  %v389_v8 = vadd.f32 %v615_v5, %v875_v50  ;;  %v618_v9 = vadd.f32 %v617_v7, %v616_v6 }
 0x123   :  { %v477_v10 = vadd.f32 %v476_v43, %v389_v8  ;;  %v392_v11 = vadd.f32 %v618_v9, %v875_v50 }
 0x125   :  { %v500_v12 = vmax.f32 %v477_v10, 0.0  ;;  %v480_v13 = vadd.f32 %v479_v48, %v392_v11  ;;  %v619_v14 = vpop.f32.mrb[24].mxu0 }
 0x126   :  { %v620_v15 = vpop.f32.mrb[25].mxu0 }
 0x127   :  { %513 = vst [vmem:[%s932_s3 + $0x50] sm:$0xff] %v500_v12  ;;  %v501_v16 = vmax.f32 %v480_v13, 0.0  ;;  %v621_v17 = vadd.f32 %v620_v15, %v619_v14  ;;  %v622_v18 = vpop.f32.mrb[26].mxu0 }
 0x128   :  { %v623_v19 = vpop.f32.mrb[27].mxu0 }
 0x129   :  { %514 = vst [vmem:[%s932_s3 + $0x58] sm:$0xff] %v501_v16  ;;  %v397_v20 = vadd.f32 %v621_v17, %v875_v50 }
 0x12b   :  { %v485_v21 = vadd.f32 %v484_v60, %v397_v20 }
 0x12d   :  { %v502_v22 = vmax.f32 %v485_v21, 0.0 }
 0x12f   :  { %515 = vst [vmem:[%s932_s3 + $0x60] sm:$0xff] %v502_v22 }

// kernel: mnist_classifier_forward.5
= control target key start
LH: loop header
LB: loop body
LE: loop exit
PB: predicated region body
PF: predicated region fallthrough
CT: control target
= control target key end

     0   :  { %vm2947_vm0 = vmmov 0   ;;  %vm1690_vm1 = vcmask 523264   ;;  %s3601_s1 = inlined_call_operand.vmem [shape: bf16[3136,128], index: 1, kind: input, shape index: {}]   ;;  %s3602_s0 = inlined_call_operand.vmem [shape: bf16[8,3136], index: 0, kind: input, shape index: {}]   ;;  %s3603_s2 = inlined_call_operand.vmem [shape: f32[1,128], index: 2, kind: input, shape index: {}]   ;;  %s3604_s3 = inlined_call_operand.vmem [shape: f32[8,128], index: 3, kind: output, shape index: {}]  }
   0x1   :  { %v2725_v0 = vld [vmem:[%s3601_s1 + $0x40] sm:$0xff]   ;;  %v2729_v4 = vld [vmem:[%s3601_s1 + $0x48] sm:$0xff]   ;;  %v2733_v8 = vld [vmem:[%s3601_s1 + $0x50] sm:$0xff]  }
   0x2   :  { %v2726_v1 = vld [vmem:[%s3601_s1] sm:$0xff]   ;;  %2442 = vmatprep.subr.bf16.mxu0 %v2725_v0  ;;  %v2730_v5 = vld [vmem:[%s3601_s1 + $0x8] sm:$0xff]   ;;  %v2734_v9 = vld [vmem:[%s3601_s1 + $0x10] sm:$0xff]  }
   0x3   :  { %v2727_v2 = vld [vmem:[%s3601_s1 + $0xc0] sm:$0xff]   ;;  %2443 = vmatpush3.bf16.msra.mxu0 %v2726_v1  ;;  %v2731_v6 = vld [vmem:[%s3601_s1 + $0xc8] sm:$0xff]   ;;  %v2735_v10 = vld [vmem:[%s3601_s1 + $0xd0] sm:$0xff]  }
   0x4   :  { %v2728_v3 = vld [vmem:[%s3601_s1 + $0x80] sm:$0xff]   ;;  %2464 = vmatprep.subr.bf16.mxu1 %v2727_v2  ;;  %2444 = vmatprep.subr.bf16.mxu0 %v2729_v4  ;;  %v2732_v7 = vld [vmem:[%s3601_s1 + $0x88] sm:$0xff]   ;;  %v2736_v11 = vld [vmem:[%s3601_s1 + $0x90] sm:$0xff]  }
   0x5   :  { %2465 = vmatpush3.bf16.msra.mxu1 %v2728_v3  ;;  %v2737_v12 = vld [vmem:[%s3601_s1 + $0x58] sm:$0xff]   ;;  %v2741_v16 = vld [vmem:[%s3601_s1 + $0x60] sm:$0xff]   ;;  %v2745_v20 = vld [vmem:[%s3601_s1 + $0x68] sm:$0xff]  }
   0x6   :  { %2466 = vmatprep.subr.bf16.mxu1 %v2731_v6  ;;  %v2738_v13 = vld [vmem:[%s3601_s1 + $0x18] sm:$0xff]   ;;  %v2742_v17 = vld [vmem:[%s3601_s1 + $0x20] sm:$0xff]   ;;  %v2746_v21 = vld [vmem:[%s3601_s1 + $0x28] sm:$0xff]  }
   0x7   :  { %2445 = vmatpush3.bf16.msra.mxu0 %v2730_v5  ;;  %v2739_v14 = vld [vmem:[%s3601_s1 + $0xd8] sm:$0xff]   ;;  %v2743_v18 = vld [vmem:[%s3601_s1 + $0xe0] sm:$0xff]   ;;  %v2747_v22 = vld [vmem:[%s3601_s1 + $0xe8] sm:$0xff]  }
   0x8   :  { %2446 = vmatprep.subr.bf16.mxu0 %v2733_v8  ;;  %v2740_v15 = vld [vmem:[%s3601_s1 + $0x98] sm:$0xff]   ;;  %v2744_v19 = vld [vmem:[%s3601_s1 + $0xa0] sm:$0xff]   ;;  %v2748_v23 = vld [vmem:[%s3601_s1 + $0xa8] sm:$0xff]  }
   0x9   :  { %2467 = vmatpush3.bf16.msra.mxu1 %v2732_v7  ;;  %v2749_v24 = vld [vmem:[%s3601_s1 + $0x70] sm:$0xff]   ;;  %v2753_v28 = vld [vmem:[%s3601_s1 + $0x78] sm:$0xff]   ;;  %v15_v31 = vld [vmem:[%s3602_s0] sm:$0xff] }
   0xa   :  { %2468 = vmatprep.subr.bf16.mxu1 %v2735_v10  ;;  %v2750_v25 = vld [vmem:[%s3601_s1 + $0x30] sm:$0xff]   ;;  %v2754_v29 = vld [vmem:[%s3601_s1 + $0x38] sm:$0xff]   ;;  %v2220_v32 = vcombine.low %v15_v31, %v15_v31  ;;  %v2221_v33 = vcombine.high %v15_v31, %v15_v31  ;;  %v2759_v35 = vld [vmem:[%s3601_s1 + $0x140] sm:$0xff]  }
   0xb   :  { %2447 = vmatpush3.bf16.msra.mxu0 %v2734_v9  ;;  %v2751_v26 = vld [vmem:[%s3601_s1 + $0xf0] sm:$0xff]   ;;  %v2755_v30 = vld [vmem:[%s3601_s1 + $0xf8] sm:$0xff]   ;;  %v16_v36 = vld [vmem:[%s3602_s0 + $0x8] sm:$0xff] }
   0xc   :  { %2448 = vmatprep.subr.bf16.mxu0 %v2737_v12  ;;  %v2752_v27 = vld [vmem:[%s3601_s1 + $0xb0] sm:$0xff]   ;;  %v2758_v34 = vld [vmem:[%s3601_s1 + $0xb8] sm:$0xff]   ;;  %1726 = vmatprep.mubr.bf16.mxu0 %v2221_v33  ;;  %v2222_v37 = vcombine.low %v16_v36, %v16_v36  ;;  %v2223_v38 = vcombine.high %v16_v36, %v16_v36  ;;  %v2762_v39 = vld [vmem:[%s3601_s1 + $0x100] sm:$0xff]  }
   0xd   :  { %2469 = vmatpush3.bf16.msra.mxu1 %v2736_v11  ;;  %v2763_v40 = vld [vmem:[%s3601_s1 + $0x1c0] sm:$0xff]   ;;  %v2765_v42 = vld [vmem:[%s3601_s1 + $0x148] sm:$0xff]   ;;  %v2769_v46 = vld [vmem:[%s3601_s1 + $0x150] sm:$0xff]  }
   0xe   :  { %2470 = vmatprep.subr.bf16.mxu1 %v2739_v14  ;;  %1766 = vmatprep.mubr.bf16.mxu1 %v2223_v38  ;;  %v2764_v41 = vld [vmem:[%s3601_s1 + $0x180] sm:$0xff]   ;;  %v2766_v43 = vld [vmem:[%s3601_s1 + $0x108] sm:$0xff]   ;;  %v2770_v47 = vld [vmem:[%s3601_s1 + $0x110] sm:$0xff]  }
   0xf   :  { %2449 = vmatpush3.bf16.msra.mxu0 %v2738_v13  ;;  %v2767_v44 = vld [vmem:[%s3601_s1 + $0x1c8] sm:$0xff]   ;;  %v2771_v48 = vld [vmem:[%s3601_s1 + $0x1d0] sm:$0xff]   ;;  %v2773_v50 = vld [vmem:[%s3601_s1 + $0x158] sm:$0xff]  }
  0x10   :  { %2450 = vmatprep.subr.bf16.mxu0 %v2741_v16  ;;  %v2768_v45 = vld [vmem:[%s3601_s1 + $0x188] sm:$0xff]   ;;  %v2772_v49 = vld [vmem:[%s3601_s1 + $0x190] sm:$0xff]   ;;  %v2774_v51 = vld [vmem:[%s3601_s1 + $0x118] sm:$0xff]  }
  0x11   :  { %2471 = vmatpush3.bf16.msra.mxu1 %v2740_v15  ;;  %v2775_v52 = vld [vmem:[%s3601_s1 + $0x1d8] sm:$0xff]   ;;  %v2777_v54 = vld [vmem:[%s3601_s1 + $0x160] sm:$0xff]   ;;  %v2781_v58 = vld [vmem:[%s3601_s1 + $0x168] sm:$0xff]  }
  0x12   :  { %2472 = vmatprep.subr.bf16.mxu1 %v2743_v18  ;;  %v2776_v53 = vld [vmem:[%s3601_s1 + $0x198] sm:$0xff]   ;;  %v2778_v55 = vld [vmem:[%s3601_s1 + $0x120] sm:$0xff]   ;;  %v2782_v59 = vld [vmem:[%s3601_s1 + $0x128] sm:$0xff]  }
  0x13   :  { %2451 = vmatpush3.bf16.msra.mxu0 %v2742_v17  ;;  %v2779_v56 = vld [vmem:[%s3601_s1 + $0x1e0] sm:$0xff]   ;;  %v2783_v60 = vld [vmem:[%s3601_s1 + $0x1e8] sm:$0xff]   ;;  %v2785_v62 = vld [vmem:[%s3601_s1 + $0x170] sm:$0xff]  }
  0x14   :  { %2452 = vmatprep.subr.bf16.mxu0 %v2745_v20  ;;  %v2780_v57 = vld [vmem:[%s3601_s1 + $0x1a0] sm:$0xff]   ;;  %v2784_v61 = vld [vmem:[%s3601_s1 + $0x1a8] sm:$0xff]   ;;  %v2786_v63 = vld [vmem:[%s3601_s1 + $0x130] sm:$0xff]  }
  0x15   :  { %2473 = vmatpush3.bf16.msra.mxu1 %v2744_v19  ;;  %v2787_v0 = vld [vmem:[%s3601_s1 + $0x1f0] sm:$0xff]   ;;  %v2789_v2 = vld [vmem:[%s3601_s1 + $0x178] sm:$0xff]   ;;  %v2795_v9 = vld [vmem:[%s3601_s1 + $0x240] sm:$0xff]  }
  0x16   :  { %2474 = vmatprep.subr.bf16.mxu1 %v2747_v22  ;;  %v2788_v1 = vld [vmem:[%s3601_s1 + $0x1b0] sm:$0xff]   ;;  %v2790_v3 = vld [vmem:[%s3601_s1 + $0x138] sm:$0xff]   ;;  %v2798_v13 = vld [vmem:[%s3601_s1 + $0x200] sm:$0xff]  }
  0x17   :  { %2453 = vmatpush3.bf16.msra.mxu0 %v2746_v21  ;;  %v2791_v4 = vld [vmem:[%s3601_s1 + $0x1f8] sm:$0xff]   ;;  %v17_v5 = vld [vmem:[%s3602_s0 + $0x10] sm:$0xff]  ;;  %v2799_v14 = vld [vmem:[%s3601_s1 + $0x2c0] sm:$0xff]  }
  0x18   :  { %2454 = vmatprep.subr.bf16.mxu0 %v2749_v24  ;;  %v2224_v6 = vcombine.low %v17_v5, %v17_v5  ;;  %v2225_v7 = vcombine.high %v17_v5, %v17_v5  ;;  %v2794_v8 = vld [vmem:[%s3601_s1 + $0x1b8] sm:$0xff]   ;;  %v2800_v15 = vld [vmem:[%s3601_s1 + $0x280] sm:$0xff]   ;;  %v2801_v16 = vld [vmem:[%s3601_s1 + $0x248] sm:$0xff]  }
  0x19   :  { %2475 = vmatpush3.bf16.msra.mxu1 %v2748_v23  ;;  %v18_v10 = vld [vmem:[%s3602_s0 + $0x18] sm:$0xff]  ;;  %v2802_v17 = vld [vmem:[%s3601_s1 + $0x208] sm:$0xff]   ;;  %v2805_v20 = vld [vmem:[%s3601_s1 + $0x250] sm:$0xff]  }
  0x1a   :  { %2476 = vmatprep.subr.bf16.mxu1 %v2751_v26  ;;  %v2226_v11 = vcombine.low %v18_v10, %v18_v10  ;;  %v2227_v12 = vcombine.high %v18_v10, %v18_v10  ;;  %v2803_v18 = vld [vmem:[%s3601_s1 + $0x2c8] sm:$0xff]   ;;  %v2806_v21 = vld [vmem:[%s3601_s1 + $0x210] sm:$0xff]   ;;  %v2809_v24 = vld [vmem:[%s3601_s1 + $0x258] sm:$0xff]  }
  0x1b   :  { %2455 = vmatpush3.bf16.msra.mxu0 %v2750_v25  ;;  %v2804_v19 = vld [vmem:[%s3601_s1 + $0x288] sm:$0xff]   ;;  %v2807_v22 = vld [vmem:[%s3601_s1 + $0x2d0] sm:$0xff]   ;;  %v2810_v25 = vld [vmem:[%s3601_s1 + $0x218] sm:$0xff]  }
  0x1c   :  { %2456 = vmatprep.subr.bf16.mxu0 %v2753_v28  ;;  %v2808_v23 = vld [vmem:[%s3601_s1 + $0x290] sm:$0xff]   ;;  %v2811_v26 = vld [vmem:[%s3601_s1 + $0x2d8] sm:$0xff]   ;;  %v2813_v28 = vld [vmem:[%s3601_s1 + $0x260] sm:$0xff]  }
  0x1d   :  { %2477 = vmatpush3.bf16.msra.mxu1 %v2752_v27  ;;  %v2812_v27 = vld [vmem:[%s3601_s1 + $0x298] sm:$0xff]   ;;  %v2816_v31 = vld [vmem:[%s3601_s1 + $0x2a0] sm:$0xff]   ;;  %v2818_v33 = vld [vmem:[%s3601_s1 + $0x228] sm:$0xff]  }
  0x1e   :  { %2478 = vmatprep.subr.bf16.mxu1 %v2755_v30  ;;  %v2815_v30 = vld [vmem:[%s3601_s1 + $0x2e0] sm:$0xff]   ;;  %v2821_v36 = vld [vmem:[%s3601_s1 + $0x270] sm:$0xff]  }
  0x1f   :  { %2457 = vmatpush3.bf16.msra.mxu0 %v2754_v29  ;;  %v2814_v29 = vld [vmem:[%s3601_s1 + $0x220] sm:$0xff]   ;;  %v2823_v38 = vld [vmem:[%s3601_s1 + $0x2f0] sm:$0xff]  }
  0x20   :  { %2486 = vmatprep.subr.bf16.mxu0 %v2759_v35  ;;  %v2820_v35 = vld [vmem:[%s3601_s1 + $0x2a8] sm:$0xff]   ;;  %v2852_v5 = vld [vmem:[%s3601_s1 + $0x3a0] sm:$0xff]   ;;  %v2857_v10 = vld [vmem:[%s3601_s1 + $0x370] sm:$0xff]  }
  0x21   :  { %2479 = vmatpush3.bf16.msra.mxu1 %v2758_v34  ;;  %v2819_v34 = vld [vmem:[%s3601_s1 + $0x2e8] sm:$0xff]  }
  0x22   :  { %1727 = vmatmul.mubr.bf16.vlgmr.msra.gmra.mrb[0].mxu0 %v2220_v32  ;;  %2508 = vmatprep.subr.bf16.mxu1 %v2763_v40  ;;  %v2817_v32 = vld [vmem:[%s3601_s1 + $0x268] sm:$0xff]   ;;  %v2825_v40 = vld [vmem:[%s3601_s1 + $0x278] sm:$0xff]  }
  0x23   :  { %2487 = vmatpush3.bf16.msra.mxu0 %v2762_v39  ;;  %1806 = vmatprep.mubr.bf16.mxu0 %v2225_v7  ;;  %v2824_v39 = vld [vmem:[%s3601_s1 + $0x2b0] sm:$0xff]   ;;  %v2854_v7 = vld [vmem:[%s3601_s1 + $0x328] sm:$0xff]  }
  0x24   :  { %1767 = vmatmul.mubr.bf16.vlgmr.msra.gmra.mrb[0].mxu1 %v2222_v37  ;;  %2488 = vmatprep.subr.bf16.mxu0 %v2765_v42  ;;  %v2822_v37 = vld [vmem:[%s3601_s1 + $0x230] sm:$0xff]   ;;  %v2827_v42 = vld [vmem:[%s3601_s1 + $0x2f8] sm:$0xff]  }
  0x25   :  { %2509 = vmatpush3.bf16.msra.mxu1 %v2764_v41  ;;  %1846 = vmatprep.mubr.bf16.mxu1 %v2227_v12  ;;  %v2826_v41 = vld [vmem:[%s3601_s1 + $0x238] sm:$0xff]   ;;  %v2859_v12 = vld [vmem:[%s3601_s1 + $0x3f0] sm:$0xff]  }
  0x26   :  { %2510 = vmatprep.subr.bf16.mxu1 %v2767_v44 }
  0x27   :  { %2489 = vmatpush3.bf16.msra.mxu0 %v2766_v43  ;;  %v19_v43 = vld [vmem:[%s3602_s0 + $0x20] sm:$0xff] }
  0x28   :  { %2490 = vmatprep.subr.bf16.mxu0 %v2769_v46  ;;  %v2228_v44 = vcombine.low %v19_v43, %v19_v43  ;;  %v2830_v46 = vld [vmem:[%s3601_s1 + $0x2b8] sm:$0xff]  }
  0x29   :  { %2511 = vmatpush3.bf16.msra.mxu1 %v2768_v45  ;;  %v2229_v45 = vcombine.high %v19_v43, %v19_v43  ;;  %v2888_v43 = vld [vmem:[%s3601_s1 + $0x4a0] sm:$0xff]  }
  0x2a   :  { %2512 = vmatprep.subr.bf16.mxu1 %v2771_v48  ;;  %v20_v48 = vld [vmem:[%s3602_s0 + $0x28] sm:$0xff] }
  0x2b   :  { %2491 = vmatpush3.bf16.msra.mxu0 %v2770_v47  ;;  %v2831_v47 = vld [vmem:[%s3601_s1 + $0x340] sm:$0xff]  }
  0x2c   :  { %2492 = vmatprep.subr.bf16.mxu0 %v2773_v50  ;;  %v2231_v50 = vcombine.high %v20_v48, %v20_v48 }
  0x2d   :  { %2513 = vmatpush3.bf16.msra.mxu1 %v2772_v49  ;;  %v2230_v49 = vcombine.low %v20_v48, %v20_v48  ;;  %v2893_v48 = vld [vmem:[%s3601_s1 + $0x470] sm:$0xff]  }
  0x2e   :  { %2514 = vmatprep.subr.bf16.mxu1 %v2775_v52  ;;  %v2835_v52 = vld [vmem:[%s3601_s1 + $0x3c0] sm:$0xff]  }
  0x2f   :  { %2493 = vmatpush3.bf16.msra.mxu0 %v2774_v51  ;;  %v2834_v51 = vld [vmem:[%s3601_s1 + $0x300] sm:$0xff]  }
  0x30   :  { %2494 = vmatprep.subr.bf16.mxu0 %v2777_v54  ;;  %v2837_v54 = vld [vmem:[%s3601_s1 + $0x348] sm:$0xff]  }
  0x31   :  { %2515 = vmatpush3.bf16.msra.mxu1 %v2776_v53  ;;  %v2836_v53 = vld [vmem:[%s3601_s1 + $0x380] sm:$0xff]  }
  0x32   :  { %2516 = vmatprep.subr.bf16.mxu1 %v2779_v56  ;;  %v2839_v56 = vld [vmem:[%s3601_s1 + $0x3c8] sm:$0xff]  }
  0x33   :  { %2495 = vmatpush3.bf16.msra.mxu0 %v2778_v55  ;;  %v2838_v55 = vld [vmem:[%s3601_s1 + $0x308] sm:$0xff]  }
  0x34   :  { %2496 = vmatprep.subr.bf16.mxu0 %v2781_v58  ;;  %v2841_v58 = vld [vmem:[%s3601_s1 + $0x350] sm:$0xff]  }
  0x35   :  { %2517 = vmatpush3.bf16.msra.mxu1 %v2780_v57  ;;  %v2840_v57 = vld [vmem:[%s3601_s1 + $0x388] sm:$0xff]  }
  0x36   :  { %2518 = vmatprep.subr.bf16.mxu1 %v2783_v60  ;;  %v2843_v60 = vld [vmem:[%s3601_s1 + $0x3d0] sm:$0xff]  }
  0x37   :  { %2497 = vmatpush3.bf16.msra.mxu0 %v2782_v59  ;;  %v2842_v59 = vld [vmem:[%s3601_s1 + $0x310] sm:$0xff]  }
  0x38   :  { %2498 = vmatprep.subr.bf16.mxu0 %v2785_v62  ;;  %v2845_v62 = vld [vmem:[%s3601_s1 + $0x358] sm:$0xff]  }
  0x39   :  { %2519 = vmatpush3.bf16.msra.mxu1 %v2784_v61  ;;  %v2844_v61 = vld [vmem:[%s3601_s1 + $0x390] sm:$0xff]  }
  0x3a   :  { %2520 = vmatprep.subr.bf16.mxu1 %v2787_v0  ;;  %v2847_v0 = vld [vmem:[%s3601_s1 + $0x3d8] sm:$0xff]  }
  0x3b   :  { %2499 = vmatpush3.bf16.msra.mxu0 %v2786_v63  ;;  %v2846_v63 = vld [vmem:[%s3601_s1 + $0x318] sm:$0xff]  }
  0x3c   :  { %2500 = vmatprep.subr.bf16.mxu0 %v2789_v2  ;;  %v2849_v2 = vld [vmem:[%s3601_s1 + $0x360] sm:$0xff]  }
  0x3d   :  { %2521 = vmatpush3.bf16.msra.mxu1 %v2788_v1  ;;  %v2848_v1 = vld [vmem:[%s3601_s1 + $0x398] sm:$0xff]  }
  0x3e   :  { %2522 = vmatprep.subr.bf16.mxu1 %v2791_v4  ;;  %v2851_v4 = vld [vmem:[%s3601_s1 + $0x3e0] sm:$0xff]  }
  0x3f   :  { %2501 = vmatpush3.bf16.msra.mxu0 %v2790_v3  ;;  %v2850_v3 = vld [vmem:[%s3601_s1 + $0x320] sm:$0xff]  }
  0x40   :  { %2530 = vmatprep.subr.bf16.mxu0 %v2795_v9  ;;  %v2856_v9 = vld [vmem:[%s3601_s1 + $0x3a8] sm:$0xff]  }
  0x41   :  { %2523 = vmatpush3.bf16.msra.mxu1 %v2794_v8  ;;  %v2855_v8 = vld [vmem:[%s3601_s1 + $0x3e8] sm:$0xff]  }
  0x42   :  { %1807 = vmatmul.mubr.bf16.vlgmr.msra.gmra.mrb[4].mxu0 %v2224_v6  ;;  %2552 = vmatprep.subr.bf16.mxu1 %v2799_v14  ;;  %v2853_v6 = vld [vmem:[%s3601_s1 + $0x368] sm:$0xff]   ;;  %v2861_v14 = vld [vmem:[%s3601_s1 + $0x378] sm:$0xff]  }
  0x43   :  { %2531 = vmatpush3.bf16.msra.mxu0 %v2798_v13  ;;  %1886 = vmatprep.mubr.bf16.mxu0 %v2229_v45  ;;  %v2860_v13 = vld [vmem:[%s3601_s1 + $0x3b0] sm:$0xff]   ;;  %v2890_v45 = vld [vmem:[%s3601_s1 + $0x428] sm:$0xff]  }
  0x44   :  { %1847 = vmatmul.mubr.bf16.vlgmr.msra.gmra.mrb[4].mxu1 %v2226_v11  ;;  %2532 = vmatprep.subr.bf16.mxu0 %v2801_v16  ;;  %v2858_v11 = vld [vmem:[%s3601_s1 + $0x330] sm:$0xff]   ;;  %v2863_v16 = vld [vmem:[%s3601_s1 + $0x3f8] sm:$0xff]  }
  0x45   :  { %2553 = vmatpush3.bf16.msra.mxu1 %v2800_v15  ;;  %1926 = vmatprep.mubr.bf16.mxu1 %v2231_v50  ;;  %v2862_v15 = vld [vmem:[%s3601_s1 + $0x338] sm:$0xff]   ;;  %v2895_v50 = vld [vmem:[%s3601_s1 + $0x4f0] sm:$0xff]  }
  0x46   :  { %2554 = vmatprep.subr.bf16.mxu1 %v2803_v18 }
  0x47   :  { %2533 = vmatpush3.bf16.msra.mxu0 %v2802_v17  ;;  %v21_v17 = vld [vmem:[%s3602_s0 + $0x30] sm:$0xff] }
  0x48   :  { %2534 = vmatprep.subr.bf16.mxu0 %v2805_v20  ;;  %v2232_v18 = vcombine.low %v21_v17, %v21_v17  ;;  %v2866_v20 = vld [vmem:[%s3601_s1 + $0x3b8] sm:$0xff]  }
  0x49   :  { %2555 = vmatpush3.bf16.msra.mxu1 %v2804_v19  ;;  %v2233_v19 = vcombine.high %v21_v17, %v21_v17  ;;  %v2924_v17 = vld [vmem:[%s3601_s1 + $0x5a0] sm:$0xff]  }
  0x4a   :  { %2556 = vmatprep.subr.bf16.mxu1 %v2807_v22  ;;  %v22_v22 = vld [vmem:[%s3602_s0 + $0x38] sm:$0xff] }
  0x4b   :  { %2535 = vmatpush3.bf16.msra.mxu0 %v2806_v21  ;;  %v2867_v21 = vld [vmem:[%s3601_s1 + $0x440] sm:$0xff]  }
  0x4c   :  { %2536 = vmatprep.subr.bf16.mxu0 %v2809_v24  ;;  %v2235_v24 = vcombine.high %v22_v22, %v22_v22 }
  0x4d   :  { %2557 = vmatpush3.bf16.msra.mxu1 %v2808_v23  ;;  %v2234_v23 = vcombine.low %v22_v22, %v22_v22  ;;  %v2929_v22 = vld [vmem:[%s3601_s1 + $0x570] sm:$0xff]  }
  0x4e   :  { %2558 = vmatprep.subr.bf16.mxu1 %v2811_v26  ;;  %v2871_v26 = vld [vmem:[%s3601_s1 + $0x4c0] sm:$0xff]  }
  0x4f   :  { %2537 = vmatpush3.bf16.msra.mxu0 %v2810_v25  ;;  %v2870_v25 = vld [vmem:[%s3601_s1 + $0x400] sm:$0xff]  }
  0x50   :  { %2538 = vmatprep.subr.bf16.mxu0 %v2813_v28  ;;  %v2873_v28 = vld [vmem:[%s3601_s1 + $0x448] sm:$0xff]  }
  0x51   :  { %2559 = vmatpush3.bf16.msra.mxu1 %v2812_v27  ;;  %v2872_v27 = vld [vmem:[%s3601_s1 + $0x480] sm:$0xff]  }
  0x52   :  { %2560 = vmatprep.subr.bf16.mxu1 %v2815_v30  ;;  %v2875_v30 = vld [vmem:[%s3601_s1 + $0x4c8] sm:$0xff]  }
  0x53   :  { %2539 = vmatpush3.bf16.msra.mxu0 %v2814_v29  ;;  %v2874_v29 = vld [vmem:[%s3601_s1 + $0x408] sm:$0xff]  }
  0x54   :  { %2540 = vmatprep.subr.bf16.mxu0 %v2817_v32  ;;  %v2877_v32 = vld [vmem:[%s3601_s1 + $0x450] sm:$0xff]  }
  0x55   :  { %2561 = vmatpush3.bf16.msra.mxu1 %v2816_v31  ;;  %v2876_v31 = vld [vmem:[%s3601_s1 + $0x488] sm:$0xff]  }
  0x56   :  { %2562 = vmatprep.subr.bf16.mxu1 %v2819_v34  ;;  %v2879_v34 = vld [vmem:[%s3601_s1 + $0x4d0] sm:$0xff]  }
  0x57   :  { %2541 = vmatpush3.bf16.msra.mxu0 %v2818_v33  ;;  %v2878_v33 = vld [vmem:[%s3601_s1 + $0x410] sm:$0xff]  }
  0x58   :  { %2542 = vmatprep.subr.bf16.mxu0 %v2821_v36  ;;  %v2881_v36 = vld [vmem:[%s3601_s1 + $0x458] sm:$0xff]  }
  0x59   :  { %2563 = vmatpush3.bf16.msra.mxu1 %v2820_v35  ;;  %v2880_v35 = vld [vmem:[%s3601_s1 + $0x490] sm:$0xff]  }
  0x5a   :  { %2564 = vmatprep.subr.bf16.mxu1 %v2823_v38  ;;  %v2883_v38 = vld [vmem:[%s3601_s1 + $0x4d8] sm:$0xff]  }
  0x5b   :  { %2543 = vmatpush3.bf16.msra.mxu0 %v2822_v37  ;;  %v2882_v37 = vld [vmem:[%s3601_s1 + $0x418] sm:$0xff]  }
  0x5c   :  { %2544 = vmatprep.subr.bf16.mxu0 %v2825_v40  ;;  %v2885_v40 = vld [vmem:[%s3601_s1 + $0x460] sm:$0xff]  }
  0x5d   :  { %2565 = vmatpush3.bf16.msra.mxu1 %v2824_v39  ;;  %v2884_v39 = vld [vmem:[%s3601_s1 + $0x498] sm:$0xff]  }
  0x5e   :  { %2566 = vmatprep.subr.bf16.mxu1 %v2827_v42  ;;  %v2887_v42 = vld [vmem:[%s3601_s1 + $0x4e0] sm:$0xff]  }
  0x5f   :  { %2545 = vmatpush3.bf16.msra.mxu0 %v2826_v41  ;;  %v2886_v41 = vld [vmem:[%s3601_s1 + $0x420] sm:$0xff]  }
  0x60   :  { %2574 = vmatprep.subr.bf16.mxu0 %v2831_v47  ;;  %v2892_v47 = vld [vmem:[%s3601_s1 + $0x4a8] sm:$0xff]  }
  0x61   :  { %2567 = vmatpush3.bf16.msra.mxu1 %v2830_v46  ;;  %v2891_v46 = vld [vmem:[%s3601_s1 + $0x4e8] sm:$0xff]  }
  0x62   :  { %1887 = vmatmul.mubr.bf16.vlgmr.msra.gmra.mrb[8].mxu0 %v2228_v44  ;;  %2596 = vmatprep.subr.bf16.mxu1 %v2835_v52  ;;  %v2889_v44 = vld [vmem:[%s3601_s1 + $0x468] sm:$0xff]   ;;  %v2897_v52 = vld [vmem:[%s3601_s1 + $0x478] sm:$0xff]  }
  0x63   :  { %2575 = vmatpush3.bf16.msra.mxu0 %v2834_v51  ;;  %1966 = vmatprep.mubr.bf16.mxu0 %v2233_v19  ;;  %v2896_v51 = vld [vmem:[%s3601_s1 + $0x4b0] sm:$0xff]   ;;  %v2926_v19 = vld [vmem:[%s3601_s1 + $0x528] sm:$0xff]  }
  0x64   :  { %1927 = vmatmul.mubr.bf16.vlgmr.msra.gmra.mrb[8].mxu1 %v2230_v49  ;;  %2576 = vmatprep.subr.bf16.mxu0 %v2837_v54  ;;  %v2894_v49 = vld [vmem:[%s3601_s1 + $0x430] sm:$0xff]   ;;  %v2899_v54 = vld [vmem:[%s3601_s1 + $0x4f8] sm:$0xff]  }
  0x65   :  { %2597 = vmatpush3.bf16.msra.mxu1 %v2836_v53  ;;  %2006 = vmatprep.mubr.bf16.mxu1 %v2235_v24  ;;  %v2898_v53 = vld [vmem:[%s3601_s1 + $0x438] sm:$0xff]   ;;  %v2931_v24 = vld [vmem:[%s3601_s1 + $0x5f0] sm:$0xff]  }
  0x66   :  { %2598 = vmatprep.subr.bf16.mxu1 %v2839_v56 }
  0x67   :  { %2577 = vmatpush3.bf16.msra.mxu0 %v2838_v55  ;;  %v23_v55 = vld [vmem:[%s3602_s0 + $0x40] sm:$0xff] }
  0x68   :  { %2578 = vmatprep.subr.bf16.mxu0 %v2841_v58  ;;  %v2236_v56 = vcombine.low %v23_v55, %v23_v55  ;;  %v2902_v58 = vld [vmem:[%s3601_s1 + $0x4b8] sm:$0xff]  }
  0x69   :  { %2599 = vmatpush3.bf16.msra.mxu1 %v2840_v57  ;;  %v2237_v57 = vcombine.high %v23_v55, %v23_v55 }
  0x6a   :  { %2600 = vmatprep.subr.bf16.mxu1 %v2843_v60  ;;  %v24_v60 = vld [vmem:[%s3602_s0 + $0x48] sm:$0xff] }
  0x6b   :  { %2579 = vmatpush3.bf16.msra.mxu0 %v2842_v59  ;;  %v2903_v59 = vld [vmem:[%s3601_s1 + $0x540] sm:$0xff]  }
  0x6c   :  { %2580 = vmatprep.subr.bf16.mxu0 %v2845_v62  ;;  %v2239_v62 = vcombine.high %v24_v60, %v24_v60 }
  0x6d   :  { %2601 = vmatpush3.bf16.msra.mxu1 %v2844_v61  ;;  %v2238_v61 = vcombine.low %v24_v60, %v24_v60 }
  0x6e   :  { %2602 = vmatprep.subr.bf16.mxu1 %v2847_v0  ;;  %v2907_v0 = vld [vmem:[%s3601_s1 + $0x5c0] sm:$0xff]  }
  0x6f   :  { %2581 = vmatpush3.bf16.msra.mxu0 %v2846_v63  ;;  %v2906_v63 = vld [vmem:[%s3601_s1 + $0x500] sm:$0xff]  }
  0x70   :  { %2582 = vmatprep.subr.bf16.mxu0 %v2849_v2  ;;  %v2909_v2 = vld [vmem:[%s3601_s1 + $0x548] sm:$0xff]  }
  0x71   :  { %2603 = vmatpush3.bf16.msra.mxu1 %v2848_v1  ;;  %v2908_v1 = vld [vmem:[%s3601_s1 + $0x580] sm:$0xff]  }
  0x72   :  { %2604 = vmatprep.subr.bf16.mxu1 %v2851_v4  ;;  %v2911_v4 = vld [vmem:[%s3601_s1 + $0x5c8] sm:$0xff]  }
  0x73   :  { %2583 = vmatpush3.bf16.msra.mxu0 %v2850_v3  ;;  %v2910_v3 = vld [vmem:[%s3601_s1 + $0x508] sm:$0xff]  }
  0x74   :  { %2584 = vmatprep.subr.bf16.mxu0 %v2853_v6  ;;  %v2913_v6 = vld [vmem:[%s3601_s1 + $0x550] sm:$0xff]  }
  0x75   :  { %2605 = vmatpush3.bf16.msra.mxu1 %v2852_v5  ;;  %v2912_v5 = vld [vmem:[%s3601_s1 + $0x588] sm:$0xff]  }
  0x76   :  { %2606 = vmatprep.subr.bf16.mxu1 %v2855_v8  ;;  %v2915_v8 = vld [vmem:[%s3601_s1 + $0x5d0] sm:$0xff]  }
  0x77   :  { %2585 = vmatpush3.bf16.msra.mxu0 %v2854_v7  ;;  %v2914_v7 = vld [vmem:[%s3601_s1 + $0x510] sm:$0xff]  }
  0x78   :  { %2586 = vmatprep.subr.bf16.mxu0 %v2857_v10  ;;  %v2917_v10 = vld [vmem:[%s3601_s1 + $0x558] sm:$0xff]  }
  0x79   :  { %2607 = vmatpush3.bf16.msra.mxu1 %v2856_v9  ;;  %v2916_v9 = vld [vmem:[%s3601_s1 + $0x590] sm:$0xff]  }
  0x7a   :  { %2608 = vmatprep.subr.bf16.mxu1 %v2859_v12  ;;  %v2919_v12 = vld [vmem:[%s3601_s1 + $0x5d8] sm:$0xff]  }
  0x7b   :  { %2587 = vmatpush3.bf16.msra.mxu0 %v2858_v11  ;;  %v2918_v11 = vld [vmem:[%s3601_s1 + $0x518] sm:$0xff]  }
  0x7c   :  { %2588 = vmatprep.subr.bf16.mxu0 %v2861_v14  ;;  %v2921_v14 = vld [vmem:[%s3601_s1 + $0x560] sm:$0xff]  }
  0x7d   :  { %2609 = vmatpush3.bf16.msra.mxu1 %v2860_v13  ;;  %v2920_v13 = vld [vmem:[%s3601_s1 + $0x598] sm:$0xff]  }
  0x7e   :  { %2610 = vmatprep.subr.bf16.mxu1 %v2863_v16  ;;  %v2923_v16 = vld [vmem:[%s3601_s1 + $0x5e0] sm:$0xff]  }
  0x7f   :  { %2589 = vmatpush3.bf16.msra.mxu0 %v2862_v15  ;;  %v2922_v15 = vld [vmem:[%s3601_s1 + $0x520] sm:$0xff]  }
  0x80   :  { %2618 = vmatprep.subr.bf16.mxu0 %v2867_v21  ;;  %v2928_v21 = vld [vmem:[%s3601_s1 + $0x5a8] sm:$0xff]  }
  0x81   :  { %2611 = vmatpush3.bf16.msra.mxu1 %v2866_v20  ;;  %v2927_v20 = vld [vmem:[%s3601_s1 + $0x5e8] sm:$0xff]  }
  0x82   :  { %1967 = vmatmul.mubr.bf16.vlgmr.msra.gmra.mrb[12].mxu0 %v2232_v18  ;;  %2640 = vmatprep.subr.bf16.mxu1 %v2871_v26  ;;  %v2925_v18 = vld [vmem:[%s3601_s1 + $0x568] sm:$0xff]   ;;  %v2933_v26 = vld [vmem:[%s3601_s1 + $0x578] sm:$0xff]  }
  0x83   :  { %2619 = vmatpush3.bf16.msra.mxu0 %v2870_v25  ;;  %2046 = vmatprep.mubr.bf16.mxu0 %v2237_v57  ;;  %v2932_v25 = vld [vmem:[%s3601_s1 + $0x5b0] sm:$0xff]  }
  0x84   :  { %2007 = vmatmul.mubr.bf16.vlgmr.msra.gmra.mrb[12].mxu1 %v2234_v23  ;;  %2620 = vmatprep.subr.bf16.mxu0 %v2873_v28  ;;  %v2930_v23 = vld [vmem:[%s3601_s1 + $0x530] sm:$0xff]   ;;  %v2935_v28 = vld [vmem:[%s3601_s1 + $0x5f8] sm:$0xff]  }
  0x85   :  { %2641 = vmatpush3.bf16.msra.mxu1 %v2872_v27  ;;  %2086 = vmatprep.mubr.bf16.mxu1 %v2239_v62  ;;  %v2934_v27 = vld [vmem:[%s3601_s1 + $0x538] sm:$0xff]  }
  0x86   :  { %2642 = vmatprep.subr.bf16.mxu1 %v2875_v30 }
  0x87   :  { %2621 = vmatpush3.bf16.msra.mxu0 %v2874_v29  ;;  %v25_v29 = vld [vmem:[%s3602_s0 + $0x50] sm:$0xff] }
  0x88   :  { %2622 = vmatprep.subr.bf16.mxu0 %v2877_v32  ;;  %v2240_v30 = vcombine.low %v25_v29, %v25_v29  ;;  %v2938_v32 = vld [vmem:[%s3601_s1 + $0x5b8] sm:$0xff]  }
  0x89   :  { %2643 = vmatpush3.bf16.msra.mxu1 %v2876_v31  ;;  %v2241_v31 = vcombine.high %v25_v29, %v25_v29 }
  0x8a   :  { %2644 = vmatprep.subr.bf16.mxu1 %v2879_v34  ;;  %v2946_v34 = vmov 0.0  }
  0x8b   :  { %2623 = vmatpush3.bf16.msra.mxu0 %v2878_v33  ;;  %v26_v33 = vld [vmem:[%s3602_s0 + $0x58] sm:$0xff] }
  0x8c   :  { %2624 = vmatprep.subr.bf16.mxu0 %v2881_v36  ;;  %v2243_v36 = vcombine.high %v26_v33, %v26_v33 }
  0x8d   :  { %2645 = vmatpush3.bf16.msra.mxu1 %v2880_v35  ;;  %v2242_v35 = vcombine.low %v26_v33, %v26_v33 }
  0x8e   :  { %2646 = vmatprep.subr.bf16.mxu1 %v2883_v38  ;;  %v2942_v38 = vld [vmem:[%s3601_s1 + $0x608] sm:$0xff]  }
  0x8f   :  { %2625 = vmatpush3.bf16.msra.mxu0 %v2882_v37  ;;  %v2941_v37 = vld [vmem:[%s3601_s1 + $0x600] sm:$0xff]  }
  0x90   :  { %2626 = vmatprep.subr.bf16.mxu0 %v2885_v40  ;;  %v2944_v40 = vld [vmem:[%s3601_s1 + $0x618] sm:$0xff]  }
  0x91   :  { %2647 = vmatpush3.bf16.msra.mxu1 %v2884_v39  ;;  %v2943_v39 = vld [vmem:[%s3601_s1 + $0x610] sm:$0xff]  }
  0x92   :  { %2648 = vmatprep.subr.bf16.mxu1 %v2887_v42 }
  0x93   :  { %2627 = vmatpush3.bf16.msra.mxu0 %v2886_v41  ;;  %v2945_v41 = vld [vmem:[%s3602_s0 + $0x60] ss:$0 sps:$4 sm:$0xff]  }
  0x94   :  { %2628 = vmatprep.subr.bf16.mxu0 %v2889_v44 }
  0x95   :  { %2649 = vmatpush3.bf16.msra.mxu1 %v2888_v43  ;;  %v2219_v43 = vld [vmem:[%s3603_s2] ss:$0 sm:$0xff] }
  0x96   :  { %2650 = vmatprep.subr.bf16.mxu1 %v2891_v46 }
  0x97   :  { %2629 = vmatpush3.bf16.msra.mxu0 %v2890_v45 }
  0x98   :  { %2630 = vmatprep.subr.bf16.mxu0 %v2893_v48 }
  0x99   :  { %2651 = vmatpush3.bf16.msra.mxu1 %v2892_v47 }
  0x9a   :  { %2652 = vmatprep.subr.bf16.mxu1 %v2895_v50 }
  0x9b   :  { %2631 = vmatpush3.bf16.msra.mxu0 %v2894_v49 }
  0x9c   :  { %2632 = vmatprep.subr.bf16.mxu0 %v2897_v52 }
  0x9d   :  { %2653 = vmatpush3.bf16.msra.mxu1 %v2896_v51 }
  0x9e   :  { %2654 = vmatprep.subr.bf16.mxu1 %v2899_v54 }
  0x9f   :  { %2633 = vmatpush3.bf16.msra.mxu0 %v2898_v53 }
  0xa0   :  { %2662 = vmatprep.subr.bf16.mxu0 %v2903_v59 }
  0xa1   :  { %2655 = vmatpush3.bf16.msra.mxu1 %v2902_v58 }
  0xa2   :  { %2047 = vmatmul.mubr.bf16.vlgmr.msra.gmra.mrb[16].mxu0 %v2236_v56  ;;  %2684 = vmatprep.subr.bf16.mxu1 %v2907_v0 }
  0xa3   :  { %2663 = vmatpush3.bf16.msra.mxu0 %v2906_v63  ;;  %2126 = vmatprep.mubr.bf16.mxu0 %v2241_v31 }
  0xa4   :  { %2087 = vmatmul.mubr.bf16.vlgmr.msra.gmra.mrb[16].mxu1 %v2238_v61  ;;  %2664 = vmatprep.subr.bf16.mxu0 %v2909_v2 }
  0xa5   :  { %2685 = vmatpush3.bf16.msra.mxu1 %v2908_v1  ;;  %2166 = vmatprep.mubr.bf16.mxu1 %v2243_v36 }
  0xa6   :  { %2686 = vmatprep.subr.bf16.mxu1 %v2911_v4 }
  0xa7   :  { %2665 = vmatpush3.bf16.msra.mxu0 %v2910_v3 }
  0xa8   :  { %2666 = vmatprep.subr.bf16.mxu0 %v2913_v6 }
  0xa9   :  { %2687 = vmatpush3.bf16.msra.mxu1 %v2912_v5 }
  0xaa   :  { %2688 = vmatprep.subr.bf16.mxu1 %v2915_v8 }
  0xab   :  { %2667 = vmatpush3.bf16.msra.mxu0 %v2914_v7 }
  0xac   :  { %2668 = vmatprep.subr.bf16.mxu0 %v2917_v10 }
  0xad   :  { %2689 = vmatpush3.bf16.msra.mxu1 %v2916_v9 }
  0xae   :  { %2690 = vmatprep.subr.bf16.mxu1 %v2919_v12 }
  0xaf   :  { %2669 = vmatpush3.bf16.msra.mxu0 %v2918_v11 }
  0xb0   :  { %2670 = vmatprep.subr.bf16.mxu0 %v2921_v14 }
  0xb1   :  { %2691 = vmatpush3.bf16.msra.mxu1 %v2920_v13 }
  0xb2   :  { %2692 = vmatprep.subr.bf16.mxu1 %v2923_v16 }
  0xb3   :  { %2671 = vmatpush3.bf16.msra.mxu0 %v2922_v15 }
  0xb4   :  { %2672 = vmatprep.subr.bf16.mxu0 %v2925_v18 }
  0xb5   :  { %2693 = vmatpush3.bf16.msra.mxu1 %v2924_v17 }
  0xb6   :  { %2694 = vmatprep.subr.bf16.mxu1 %v2927_v20 }
  0xb7   :  { %2673 = vmatpush3.bf16.msra.mxu0 %v2926_v19 }
  0xb8   :  { %2674 = vmatprep.subr.bf16.mxu0 %v2929_v22 }
  0xb9   :  { %2695 = vmatpush3.bf16.msra.mxu1 %v2928_v21 }
  0xba   :  { %2696 = vmatprep.subr.bf16.mxu1 %v2931_v24 }
  0xbb   :  { %2675 = vmatpush3.bf16.msra.mxu0 %v2930_v23 }
  0xbc   :  { %2676 = vmatprep.subr.bf16.mxu0 %v2933_v26 }
  0xbd   :  { %2697 = vmatpush3.bf16.msra.mxu1 %v2932_v25 }
  0xbe   :  { %2698 = vmatprep.subr.bf16.mxu1 %v2935_v28 }
  0xbf   :  { %2677 = vmatpush3.bf16.msra.mxu0 %v2934_v27 }
  0xc0   :  { %2711 = vmatprep.subr.bf16.mxu0 %v2946_v34 }
  0xc1   :  { %2699 = vmatpush3.bf16.msra.mxu1 %v2938_v32 }
  0xc2   :  { %2127 = vmatmul.mubr.bf16.vlgmr.msra.gmra.mrb[20].mxu0 %v2240_v30 }
  0xc3   :  { %2712 = vmatpush3.bf16.msra.mxu0 %v2941_v37  ;;  %2719 = vmatprep.mubr.msk.bf16.mxu0 %vm2947_vm0, %v2946_v34 }
  0xc4   :  { %2167 = vmatmul.mubr.bf16.vlgmr.msra.gmra.mrb[20].mxu1 %v2242_v35  ;;  %2713 = vmatprep.subr.bf16.mxu0 %v2946_v34 }
  0xc7   :  { %2714 = vmatpush3.bf16.msra.mxu0 %v2942_v38 }
  0xc8   :  { %2715 = vmatprep.subr.bf16.mxu0 %v2946_v34 }
  0xcb   :  { %2716 = vmatpush3.bf16.msra.mxu0 %v2943_v39 }
  0xcc   :  { %2717 = vmatprep.subr.bf16.mxu0 %v2946_v34 }
  0xcf   :  { %2718 = vmatpush3.bf16.msra.mxu0 %v2944_v40 }
  0xd2   :  { %2720 = vmatmul.mubr.msk.bf16.vlgmr.msra.gmra.mrb[24].mxu0 %vm1690_vm1, %v2945_v41 }
  0xf5   :  { %v2458_v42 = vpop.f32.mrb[0].mxu0 }
  0xf6   :  { %v2459_v44 = vpop.f32.mrb[1].mxu0 }
  0xf7   :  { %v2460_v45 = vadd.f32 %v2459_v44, %v2458_v42  ;;  %v2461_v46 = vpop.f32.mrb[2].mxu0  ;;  %v2480_v47 = vpop.f32.mrb[0].mxu1 }
  0xf8   :  { %v2462_v48 = vpop.f32.mrb[3].mxu0  ;;  %v2481_v49 = vpop.f32.mrb[1].mxu1 }
  0xf9   :  { %v1729_v50 = vadd.f32 %v2460_v45, %v2219_v43  ;;  %v2482_v51 = vadd.f32 %v2481_v49, %v2480_v47  ;;  %v2483_v52 = vpop.f32.mrb[2].mxu1 }
  0xfa   :  { %v2484_v53 = vpop.f32.mrb[3].mxu1 }
  0xfb   :  { %v1769_v54 = vadd.f32 %v2482_v51, %v1729_v50 }
 0x115   :  { %v2502_v55 = vpop.f32.mrb[4].mxu0 }
 0x116   :  { %v2503_v56 = vpop.f32.mrb[5].mxu0 }
 0x117   :  { %v2504_v57 = vadd.f32 %v2503_v56, %v2502_v55  ;;  %v2505_v58 = vpop.f32.mrb[6].mxu0  ;;  %v2524_v59 = vpop.f32.mrb[4].mxu1 }
 0x118   :  { %v2506_v60 = vpop.f32.mrb[7].mxu0  ;;  %v2525_v62 = vpop.f32.mrb[5].mxu1 }
 0x119   :  { %v1809_v61 = vadd.f32 %v2504_v57, %v1769_v54  ;;  %v2526_v63 = vadd.f32 %v2525_v62, %v2524_v59  ;;  %v2527_v0 = vpop.f32.mrb[6].mxu1 }
 0x11a   :  { %v2528_v1 = vpop.f32.mrb[7].mxu1 }
 0x11b   :  { %v1849_v2 = vadd.f32 %v2526_v63, %v1809_v61 }
 0x135   :  { %v2546_v3 = vpop.f32.mrb[8].mxu0 }
 0x136   :  { %v2547_v4 = vpop.f32.mrb[9].mxu0 }
 0x137   :  { %v2548_v5 = vadd.f32 %v2547_v4, %v2546_v3  ;;  %v2549_v6 = vpop.f32.mrb[10].mxu0  ;;  %v2568_v7 = vpop.f32.mrb[8].mxu1 }
 0x138   :  { %v2550_v8 = vpop.f32.mrb[11].mxu0  ;;  %v2569_v9 = vpop.f32.mrb[9].mxu1 }
 0x139   :  { %v1889_v10 = vadd.f32 %v2548_v5, %v1849_v2  ;;  %v2570_v11 = vadd.f32 %v2569_v9, %v2568_v7  ;;  %v2571_v12 = vpop.f32.mrb[10].mxu1 }
 0x13a   :  { %v2572_v13 = vpop.f32.mrb[11].mxu1 }
 0x13b   :  { %v1929_v14 = vadd.f32 %v2570_v11, %v1889_v10 }
 0x155   :  { %v2590_v15 = vpop.f32.mrb[12].mxu0 }
 0x156   :  { %v2591_v16 = vpop.f32.mrb[13].mxu0 }
 0x157   :  { %v2592_v17 = vadd.f32 %v2591_v16, %v2590_v15  ;;  %v2593_v18 = vpop.f32.mrb[14].mxu0  ;;  %v2612_v19 = vpop.f32.mrb[12].mxu1 }
 0x158   :  { %v2594_v20 = vpop.f32.mrb[15].mxu0  ;;  %v2613_v21 = vpop.f32.mrb[13].mxu1 }
 0x159   :  { %v1969_v22 = vadd.f32 %v2592_v17, %v1929_v14  ;;  %v2614_v23 = vadd.f32 %v2613_v21, %v2612_v19  ;;  %v2615_v24 = vpop.f32.mrb[14].mxu1 }
 0x15a   :  { %v2616_v25 = vpop.f32.mrb[15].mxu1 }
 0x15b   :  { %v2009_v26 = vadd.f32 %v2614_v23, %v1969_v22 }
 0x175   :  { %v2634_v27 = vpop.f32.mrb[16].mxu0 }
 0x176   :  { %v2635_v28 = vpop.f32.mrb[17].mxu0 }
 0x177   :  { %v2636_v29 = vadd.f32 %v2635_v28, %v2634_v27  ;;  %v2637_v30 = vpop.f32.mrb[18].mxu0  ;;  %v2656_v31 = vpop.f32.mrb[16].mxu1 }
 0x178   :  { %v2638_v32 = vpop.f32.mrb[19].mxu0  ;;  %v2657_v34 = vpop.f32.mrb[17].mxu1 }
 0x179   :  { %v2049_v33 = vadd.f32 %v2636_v29, %v2009_v26  ;;  %v2658_v35 = vadd.f32 %v2657_v34, %v2656_v31  ;;  %v2659_v36 = vpop.f32.mrb[18].mxu1 }
 0x17a   :  { %v2660_v37 = vpop.f32.mrb[19].mxu1 }
 0x17b   :  { %v2089_v38 = vadd.f32 %v2658_v35, %v2049_v33 }
 0x195   :  { %v2678_v39 = vpop.f32.mrb[20].mxu0 }
 0x196   :  { %v2679_v40 = vpop.f32.mrb[21].mxu0 }
 0x197   :  { %v2680_v41 = vadd.f32 %v2679_v40, %v2678_v39  ;;  %v2681_v42 = vpop.f32.mrb[22].mxu0  ;;  %v2700_v43 = vpop.f32.mrb[20].mxu1 }
 0x198   :  { %v2682_v44 = vpop.f32.mrb[23].mxu0  ;;  %v2701_v45 = vpop.f32.mrb[21].mxu1 }
 0x199   :  { %v2129_v46 = vadd.f32 %v2680_v41, %v2089_v38  ;;  %v2702_v47 = vadd.f32 %v2701_v45, %v2700_v43  ;;  %v2703_v48 = vpop.f32.mrb[22].mxu1 }
 0x19a   :  { %v2704_v49 = vpop.f32.mrb[23].mxu1 }
 0x19b   :  { %v2169_v50 = vadd.f32 %v2702_v47, %v2129_v46 }
 0x1a5   :  { %v2208_v51 = vpop.f32.mrb[24].mxu0 }
 0x1a6   :  { %v2209_v52 = vadd.f32 %v2208_v51, %v2169_v50  ;;  %v2721_v53 = vpop.f32.mrb[25].mxu0 }
 0x1a7   :  { %v2211_v54 = vpop.f32.mrb[26].mxu0 }
 0x1a8   :  { %2214 = vst [vmem:[%s3604_s3] sm:$0xff] %v2209_v52  ;;  %v2722_v55 = vpop.f32.mrb[27].mxu0 }

</bundles_post_ra>
